<compile_context>
chip_gen: v5e
topology: v5e:2x2
jax: 0.10.0
libtpu: 0.0.40
codegen_flags: <defaults>
</compile_context>

<pallas_src>
import functools

import jax
import jax.numpy as jnp
from jax.experimental import pallas as pl
from jax.experimental.pallas import tpu as pltpu


# ----------------------------------------------------------------------------
# Kernels
# ----------------------------------------------------------------------------
def _conv3x3_fused_kernel(*refs, H, W, Cin, Cout, prologue):
    """[optional BN+ReLU prologue] -> 3x3 'same' conv -> channel moments.

    Channel-major, flattened-spatial (lane-dense) layout:
      x_ref      : (Cin, H*W)      one image's activation
      colidx_ref : (1, H*W) int32  column index (p % W), precomputed host-side
      pscale_ref : (Cin, 1)        [prologue only] folded-BN scale (prev layer)
      pshift_ref : (Cin, 1)        [prologue only] folded-BN shift (prev layer)
      w_ref      : (Cout, 9*Cin)   weights, tap-major / cin-minor
      y_ref      : (Cout, H*W)     raw (bias-free) conv output
      sum_ref    : (Cout, 1)       per-image channel sum of conv output
      sq_ref     : (Cout, 1)       per-image channel sum of squares
      im2col_ref : (9*Cin, H*W)    VMEM scratch holding the im2col matrix
    """
    if prologue:
        (x_ref, colidx_ref, pscale_ref, pshift_ref, w_ref,
         y_ref, sum_ref, sq_ref, im2col_ref) = refs
    else:
        (x_ref, colidx_ref, w_ref, y_ref, sum_ref, sq_ref, im2col_ref) = refs

    HW = H * W
    x = x_ref[...]                                          # (Cin, HW) f32
    if prologue:
        # Previous layer's BatchNorm + ReLU, fused as this conv's prologue.
        x = jnp.maximum(x * pscale_ref[...] + pshift_ref[...], 0.0)

    # Flat spatial index p = h*W + w (lane iota) and the column index w
    # (host-precomputed so no in-kernel integer div/mod is needed).
    p = jax.lax.broadcasted_iota(jnp.int32, (1, HW), 1)
    cid = colidx_ref[...]                                   # (1, HW) int32

    # Build the im2col matrix: each of the 9 taps is a lane roll of the
    # flattened activation plus boundary masks (zero 'same' padding handled
    # entirely in-kernel -- no HBM halo copies).
    for dy in range(3):
        for dx in range(3):
            s = (dy - 1) * W + (dx - 1)                     # flat source shift
            tap = x if s == 0 else pltpu.roll(x, shift=(-s) % HW, axis=1)
            conds = []
            if dy == 0:
                conds.append(p >= W)                        # source row >= 0
            elif dy == 2:
                conds.append(p < (H - 1) * W)               # source row < H
            if dx == 0:
                conds.append(cid >= 1)                      # source col >= 0
            elif dx == 2:
                conds.append(cid <= W - 2)                  # source col < W
            if conds:
                m = conds[0]
                for c in conds[1:]:
                    m = jnp.logical_and(m, c)
                tap = jnp.where(m, tap, 0.0)
            t = dy * 3 + dx
            im2col_ref[t * Cin:(t + 1) * Cin, :] = tap

    # Single K = 9*Cin MXU contraction; accumulator is (Cout, H*W): the long
    # spatial axis is in lanes -> tiny vreg footprint, unmasked stores.
    acc = jnp.dot(w_ref[...], im2col_ref[...],
                  preferred_element_type=jnp.float32)       # (Cout, HW)

    y_ref[...] = acc.astype(y_ref.dtype)
    # Per-image channel moments (of the bias-free conv output) for BN stats.
    sum_ref[...] = jnp.sum(acc, axis=1, keepdims=True)
    sq_ref[...] = jnp.sum(acc * acc, axis=1, keepdims=True)


def _bn_relu_kernel(x_ref, scale_ref, shift_ref, o_ref):
    """Final folded-BatchNorm + ReLU epilogue.  x_ref/o_ref: (C, H*W)."""
    o_ref[...] = jnp.maximum(x_ref[...] * scale_ref[...] + shift_ref[...],
                             0.0).astype(o_ref.dtype)


# ----------------------------------------------------------------------------
# Wrappers
# ----------------------------------------------------------------------------
def _conv3x3_fused(x_flat, w_mat, col_idx, H, W, scale=None, shift=None):
    """x_flat: (N, Cin, H*W) f32, w_mat: (Cout, 9*Cin), col_idx: (1, H*W) i32.

    Optional scale/shift (Cin,) apply the previous layer's BN+ReLU as prologue.
    Returns (y_raw (N,Cout,H*W), chan_sum (N,Cout,1), chan_sumsq (N,Cout,1)).
    """
    N, Cin, HW = x_flat.shape
    Cout = w_mat.shape[0]
    prologue = scale is not None

    kernel = functools.partial(_conv3x3_fused_kernel, H=H, W=W, Cin=Cin,
                               Cout=Cout, prologue=prologue)

    in_specs = [pl.BlockSpec((pl.Squeezed(), Cin, HW), lambda n: (n, 0, 0)),
                pl.BlockSpec((1, HW), lambda n: (0, 0))]
    args = [x_flat, col_idx]
    if prologue:
        in_specs += [pl.BlockSpec((Cin, 1), lambda n: (0, 0)),
                     pl.BlockSpec((Cin, 1), lambda n: (0, 0))]
        args += [scale.reshape(Cin, 1).astype(jnp.float32),
                 shift.reshape(Cin, 1).astype(jnp.float32)]
    in_specs.append(pl.BlockSpec((Cout, 9 * Cin), lambda n: (0, 0)))
    args.append(w_mat)

    return pl.pallas_call(
        kernel,
        out_shape=(jax.ShapeDtypeStruct((N, Cout, HW), jnp.float32),
                   jax.ShapeDtypeStruct((N, Cout, 1), jnp.float32),
                   jax.ShapeDtypeStruct((N, Cout, 1), jnp.float32)),
        grid_spec=pltpu.PrefetchScalarGridSpec(
            num_scalar_prefetch=0,
            grid=(N,),
            in_specs=in_specs,
            out_specs=[
                pl.BlockSpec((pl.Squeezed(), Cout, HW), lambda n: (n, 0, 0)),
                pl.BlockSpec((pl.Squeezed(), Cout, 1), lambda n: (n, 0, 0)),
                pl.BlockSpec((pl.Squeezed(), Cout, 1), lambda n: (n, 0, 0)),
            ],
            scratch_shapes=[pltpu.VMEM((9 * Cin, HW), jnp.float32)]),
        compiler_params=pltpu.CompilerParams(
            dimension_semantics=("parallel",)),
    )(*args)


def _bn_relu(x_flat, scale, shift):
    """Apply folded BatchNorm + ReLU.  x_flat: (N, C, H*W)."""
    N, C, HW = x_flat.shape
    return pl.pallas_call(
        _bn_relu_kernel,
        out_shape=jax.ShapeDtypeStruct((N, C, HW), jnp.float32),
        grid_spec=pltpu.PrefetchScalarGridSpec(
            num_scalar_prefetch=0,
            grid=(N,),
            in_specs=[pl.BlockSpec((pl.Squeezed(), C, HW), lambda n: (n, 0, 0)),
                      pl.BlockSpec((C, 1), lambda n: (0, 0)),
                      pl.BlockSpec((C, 1), lambda n: (0, 0))],
            out_specs=pl.BlockSpec((pl.Squeezed(), C, HW), lambda n: (n, 0, 0)),
        ),
        compiler_params=pltpu.CompilerParams(dimension_semantics=("parallel",)),
    )(x_flat, scale.reshape(C, 1).astype(jnp.float32),
      shift.reshape(C, 1).astype(jnp.float32))


def _bn_scale_shift(chan_sum, chan_sq, gamma, beta, count, eps=1e-5):
    """Fold train-mode BatchNorm2d (batch stats, biased var) into scale/shift."""
    mean = jnp.sum(chan_sum, axis=(0, 2)) / count
    ex2 = jnp.sum(chan_sq, axis=(0, 2)) / count
    var = jnp.maximum(ex2 - mean * mean, 0.0)
    scale = gamma * jax.lax.rsqrt(var + eps)
    shift = beta - mean * scale
    return scale, shift


def _weight_matrix(w_hwio):
    """(3, 3, Cin, Cout) HWIO -> (Cout, 9*Cin), tap-major / cin-minor."""
    cout = w_hwio.shape[-1]
    return jnp.transpose(w_hwio, (3, 0, 1, 2)).reshape(cout, -1).astype(jnp.float32)


def double_conv(x_nchw, params, eps=1e-5):
    """DoubleConv forward.  x_nchw: (N, Cin, H, W) -> (N, Cout, H, W).

    Matches PyTorch train-mode semantics (BatchNorm uses batch statistics).
    Conv biases are omitted: they cancel exactly under train-mode BatchNorm.
    """
    N, Cin, H, W = x_nchw.shape
    HW = H * W
    Cout = params["w1"].shape[-1]
    count = N * HW

    x_flat = x_nchw.reshape(N, Cin, HW).astype(jnp.float32)   # free reshape
    col_idx = (jnp.arange(HW, dtype=jnp.int32) % W).reshape(1, HW)

    # Layer 1: conv1 + per-image channel moments.
    y1, s1, q1 = _conv3x3_fused(x_flat, _weight_matrix(params["w1"]),
                                col_idx, H, W)
    scale1, shift1 = _bn_scale_shift(s1, q1, params["g1"], params["be1"],
                                     count, eps)

    # Layer 2: BN1 + ReLU1 fused as prologue, conv2 + moments.
    y2, s2, q2 = _conv3x3_fused(y1, _weight_matrix(params["w2"]),
                                col_idx, H, W, scale=scale1, shift=shift1)
    scale2, shift2 = _bn_scale_shift(s2, q2, params["g2"], params["be2"],
                                     count, eps)

    # Final BN2 + ReLU2 epilogue.
    out = _bn_relu(y2, scale2, shift2)
    return out.reshape(N, Cout, H, W)                         # already NCHW


# ----------------------------------------------------------------------------
# Pure-JAX reference (with conv biases, to verify they indeed cancel)
# ----------------------------------------------------------------------------
def _ref_double_conv(x_nchw, params, eps=1e-5):
    def conv(x, w, b):   # x NHWC, w (kh,kw,Cin,Cout)
        y = jax.lax.conv_general_dilated(
            x, w, window_strides=(1, 1), padding="SAME",
            dimension_numbers=("NHWC", "HWIO", "NHWC"))
        return y + b
    def bn_relu(x, g, be):
        mean = jnp.mean(x, axis=(0, 1, 2))
        var = jnp.mean(jnp.square(x - mean), axis=(0, 1, 2))   # biased variance
        y = (x - mean) / jnp.sqrt(var + eps) * g + be
        return jnp.maximum(y, 0.0)
    x = jnp.transpose(x_nchw, (0, 2, 3, 1)).astype(jnp.float32)
    x = bn_relu(conv(x, params["w1"], params["b1"]), params["g1"], params["be1"])
    x = bn_relu(conv(x, params["w2"], params["b2"]), params["g2"], params["be2"])
    return jnp.transpose(x, (0, 3, 1, 2))


# ----------------------------------------------------------------------------
# Main
# ----------------------------------------------------------------------------
if __name__ == "__main__":
    N, IN_CH, OUT_CH, H, W = 2, 4, 8, 16, 16

    key = jax.random.PRNGKey(0)
    kx, kw1, kb1, kw2, kb2, kg1, kbe1, kg2, kbe2 = jax.random.split(key, 9)

    x = jax.random.normal(kx, (N, IN_CH, H, W), dtype=jnp.float32)

    params = {
        "w1": 0.2 * jax.random.normal(kw1, (3, 3, IN_CH, OUT_CH), jnp.float32),
        "b1": 0.1 * jax.random.normal(kb1, (OUT_CH,), jnp.float32),
        "g1": 1.0 + 0.1 * jax.random.normal(kg1, (OUT_CH,), jnp.float32),
        "be1": 0.1 * jax.random.normal(kbe1, (OUT_CH,), jnp.float32),
        "w2": 0.2 * jax.random.normal(kw2, (3, 3, OUT_CH, OUT_CH), jnp.float32),
        "b2": 0.1 * jax.random.normal(kb2, (OUT_CH,), jnp.float32),
        "g2": 1.0 + 0.1 * jax.random.normal(kg2, (OUT_CH,), jnp.float32),
        "be2": 0.1 * jax.random.normal(kbe2, (OUT_CH,), jnp.float32),
    }

    out = jax.block_until_ready(jax.jit(double_conv)(x, params))
    assert out.shape == (N, OUT_CH, H, W), out.shape

    # Reference keeps the conv biases; the Pallas path drops them (they cancel
    # exactly under train-mode BatchNorm), so the outputs must still agree.
    ref = jax.block_until_ready(_ref_double_conv(x, params))
    assert jnp.allclose(out, ref, atol=5e-4, rtol=5e-4), float(
        jnp.max(jnp.abs(out - ref)))

    print("KERNEL_OK")
</pallas_src>

<mosaic_0001>
module attributes {stable_mosaic.version = 11 : i64} {
  func.func @_conv3x3_fused_kernel(%arg0: i32, %arg1: memref<1x8x256xf32, #tpu.memory_space<vmem>>, %arg2: memref<1x256xi32, #tpu.memory_space<vmem>>, %arg3: memref<8x1xf32, #tpu.memory_space<vmem>>, %arg4: memref<8x1xf32, #tpu.memory_space<vmem>>, %arg5: memref<8x72xf32, #tpu.memory_space<vmem>>, %arg6: memref<1x8x256xf32, #tpu.memory_space<vmem>>, %arg7: memref<1x8x1xf32, #tpu.memory_space<vmem>>, %arg8: memref<1x8x1xf32, #tpu.memory_space<vmem>>, %arg9: memref<72x256xf32, #tpu.memory_space<vmem>>) attributes {dimension_semantics = [#tpu.dimension_semantics<parallel>], iteration_bounds = array<i64: 2>, scalar_prefetch = 0 : i64, scratch_operands = 1 : i64, tpu.core_type = #tpu.core_type<tc>, window_params = [{transform_indices = @transform_0, window_bounds = array<i64: 1, 8, 256>}, {pipeline_mode = #tpu.pipeline_mode<synchronous>, transform_indices = @transform_1, window_bounds = array<i64: 1, 256>}, {pipeline_mode = #tpu.pipeline_mode<synchronous>, transform_indices = @transform_2, window_bounds = array<i64: 8, 1>}, {pipeline_mode = #tpu.pipeline_mode<synchronous>, transform_indices = @transform_3, window_bounds = array<i64: 8, 1>}, {pipeline_mode = #tpu.pipeline_mode<synchronous>, transform_indices = @transform_4, window_bounds = array<i64: 8, 72>}, {transform_indices = @transform_5, window_bounds = array<i64: 1, 8, 256>}, {transform_indices = @transform_6, window_bounds = array<i64: 1, 8, 1>}, {transform_indices = @transform_7, window_bounds = array<i64: 1, 8, 1>}]} {
    %c0 = arith.constant 0 : index
    %c0_0 = arith.constant 0 : index
    %c0_1 = arith.constant 0 : index
    %0 = vector.load %arg1[%c0, %c0_0, %c0_1] : memref<1x8x256xf32, #tpu.memory_space<vmem>>, vector<1x8x256xf32>
    %1 = vector.shape_cast %0 : vector<1x8x256xf32> to vector<8x256xf32>
    %c0_2 = arith.constant 0 : index
    %c0_3 = arith.constant 0 : index
    %2 = vector.load %arg3[%c0_2, %c0_3] : memref<8x1xf32, #tpu.memory_space<vmem>>, vector<8x1xf32>
    %3 = vector.broadcast %2 : vector<8x1xf32> to vector<8x256xf32>
    %4 = arith.mulf %1, %3 : vector<8x256xf32>
    %c0_4 = arith.constant 0 : index
    %c0_5 = arith.constant 0 : index
    %5 = vector.load %arg4[%c0_4, %c0_5] : memref<8x1xf32, #tpu.memory_space<vmem>>, vector<8x1xf32>
    %6 = vector.broadcast %5 : vector<8x1xf32> to vector<8x256xf32>
    %7 = arith.addf %4, %6 : vector<8x256xf32>
    %cst = arith.constant 0.000000e+00 : f32
    %8 = vector.broadcast %cst : f32 to vector<8x256xf32>
    %9 = arith.maximumf %7, %8 : vector<8x256xf32>
    %10 = tpu.iota {dimensions = array<i32: 1>} : vector<1x256xi32>
    %c0_6 = arith.constant 0 : index
    %c0_7 = arith.constant 0 : index
    %11 = vector.load %arg2[%c0_6, %c0_7] : memref<1x256xi32, #tpu.memory_space<vmem>>, vector<1x256xi32>
    %c17_i32 = arith.constant 17 : i32
    %12 = tpu.dynamic_rotate %9 by %c17_i32 dim 1 : vector<8x256xf32>, i32 -> vector<8x256xf32>
    %c16_i32 = arith.constant 16 : i32
    %13 = vector.broadcast %c16_i32 : i32 to vector<1x256xi32>
    %14 = arith.cmpi sge, %10, %13 : vector<1x256xi32>
    %c1_i32 = arith.constant 1 : i32
    %15 = vector.broadcast %c1_i32 : i32 to vector<1x256xi32>
    %16 = arith.cmpi sge, %11, %15 : vector<1x256xi32>
    %17 = arith.andi %14, %16 : vector<1x256xi1>
    %cst_8 = arith.constant 0.000000e+00 : f32
    %18 = vector.shape_cast %17 : vector<1x256xi1> to vector<1x256xi1>
    %19 = vector.broadcast %18 : vector<1x256xi1> to vector<8x256xi1>
    %20 = vector.broadcast %cst_8 : f32 to vector<8x256xf32>
    %21 = arith.select %19, %12, %20 : vector<8x256xi1>, vector<8x256xf32>
    %c0_9 = arith.constant 0 : index
    %c0_10 = arith.constant 0 : index
    %22 = vector.load %arg9[%c0_9, %c0_10] : memref<72x256xf32, #tpu.memory_space<vmem>>, vector<8x256xf32>
    tpu.vector_store %arg9[%c0_9, %c0_10], %21 {strides = array<i32>} : memref<72x256xf32, #tpu.memory_space<vmem>>, vector<8x256xf32>,
    %c16_i32_11 = arith.constant 16 : i32
    %23 = tpu.dynamic_rotate %9 by %c16_i32_11 dim 1 : vector<8x256xf32>, i32 -> vector<8x256xf32>
    %c16_i32_12 = arith.constant 16 : i32
    %24 = vector.broadcast %c16_i32_12 : i32 to vector<1x256xi32>
    %25 = arith.cmpi sge, %10, %24 : vector<1x256xi32>
    %cst_13 = arith.constant 0.000000e+00 : f32
    %26 = vector.shape_cast %25 : vector<1x256xi1> to vector<1x256xi1>
    %27 = vector.broadcast %26 : vector<1x256xi1> to vector<8x256xi1>
    %28 = vector.broadcast %cst_13 : f32 to vector<8x256xf32>
    %29 = arith.select %27, %23, %28 : vector<8x256xi1>, vector<8x256xf32>
    %c8 = arith.constant 8 : index
    %c0_14 = arith.constant 0 : index
    %30 = vector.load %arg9[%c8, %c0_14] : memref<72x256xf32, #tpu.memory_space<vmem>>, vector<8x256xf32>
    tpu.vector_store %arg9[%c8, %c0_14], %29 {strides = array<i32>} : memref<72x256xf32, #tpu.memory_space<vmem>>, vector<8x256xf32>,
    %c15_i32 = arith.constant 15 : i32
    %31 = tpu.dynamic_rotate %9 by %c15_i32 dim 1 : vector<8x256xf32>, i32 -> vector<8x256xf32>
    %c16_i32_15 = arith.constant 16 : i32
    %32 = vector.broadcast %c16_i32_15 : i32 to vector<1x256xi32>
    %33 = arith.cmpi sge, %10, %32 : vector<1x256xi32>
    %c14_i32 = arith.constant 14 : i32
    %34 = vector.broadcast %c14_i32 : i32 to vector<1x256xi32>
    %35 = arith.cmpi sle, %11, %34 : vector<1x256xi32>
    %36 = arith.andi %33, %35 : vector<1x256xi1>
    %cst_16 = arith.constant 0.000000e+00 : f32
    %37 = vector.shape_cast %36 : vector<1x256xi1> to vector<1x256xi1>
    %38 = vector.broadcast %37 : vector<1x256xi1> to vector<8x256xi1>
    %39 = vector.broadcast %cst_16 : f32 to vector<8x256xf32>
    %40 = arith.select %38, %31, %39 : vector<8x256xi1>, vector<8x256xf32>
    %c16 = arith.constant 16 : index
    %c0_17 = arith.constant 0 : index
    %41 = vector.load %arg9[%c16, %c0_17] : memref<72x256xf32, #tpu.memory_space<vmem>>, vector<8x256xf32>
    tpu.vector_store %arg9[%c16, %c0_17], %40 {strides = array<i32>} : memref<72x256xf32, #tpu.memory_space<vmem>>, vector<8x256xf32>,
    %c1_i32_18 = arith.constant 1 : i32
    %42 = tpu.dynamic_rotate %9 by %c1_i32_18 dim 1 : vector<8x256xf32>, i32 -> vector<8x256xf32>
    %c1_i32_19 = arith.constant 1 : i32
    %43 = vector.broadcast %c1_i32_19 : i32 to vector<1x256xi32>
    %44 = arith.cmpi sge, %11, %43 : vector<1x256xi32>
    %cst_20 = arith.constant 0.000000e+00 : f32
    %45 = vector.shape_cast %44 : vector<1x256xi1> to vector<1x256xi1>
    %46 = vector.broadcast %45 : vector<1x256xi1> to vector<8x256xi1>
    %47 = vector.broadcast %cst_20 : f32 to vector<8x256xf32>
    %48 = arith.select %46, %42, %47 : vector<8x256xi1>, vector<8x256xf32>
    %c24 = arith.constant 24 : index
    %c0_21 = arith.constant 0 : index
    %49 = vector.load %arg9[%c24, %c0_21] : memref<72x256xf32, #tpu.memory_space<vmem>>, vector<8x256xf32>
    tpu.vector_store %arg9[%c24, %c0_21], %48 {strides = array<i32>} : memref<72x256xf32, #tpu.memory_space<vmem>>, vector<8x256xf32>,
    %c32 = arith.constant 32 : index
    %c0_22 = arith.constant 0 : index
    %50 = vector.load %arg9[%c32, %c0_22] : memref<72x256xf32, #tpu.memory_space<vmem>>, vector<8x256xf32>
    tpu.vector_store %arg9[%c32, %c0_22], %9 {strides = array<i32>} : memref<72x256xf32, #tpu.memory_space<vmem>>, vector<8x256xf32>,
    %c255_i32 = arith.constant 255 : i32
    %51 = tpu.dynamic_rotate %9 by %c255_i32 dim 1 : vector<8x256xf32>, i32 -> vector<8x256xf32>
    %c14_i32_23 = arith.constant 14 : i32
    %52 = vector.broadcast %c14_i32_23 : i32 to vector<1x256xi32>
    %53 = arith.cmpi sle, %11, %52 : vector<1x256xi32>
    %cst_24 = arith.constant 0.000000e+00 : f32
    %54 = vector.shape_cast %53 : vector<1x256xi1> to vector<1x256xi1>
    %55 = vector.broadcast %54 : vector<1x256xi1> to vector<8x256xi1>
    %56 = vector.broadcast %cst_24 : f32 to vector<8x256xf32>
    %57 = arith.select %55, %51, %56 : vector<8x256xi1>, vector<8x256xf32>
    %c40 = arith.constant 40 : index
    %c0_25 = arith.constant 0 : index
    %58 = vector.load %arg9[%c40, %c0_25] : memref<72x256xf32, #tpu.memory_space<vmem>>, vector<8x256xf32>
    tpu.vector_store %arg9[%c40, %c0_25], %57 {strides = array<i32>} : memref<72x256xf32, #tpu.memory_space<vmem>>, vector<8x256xf32>,
    %c241_i32 = arith.constant 241 : i32
    %59 = tpu.dynamic_rotate %9 by %c241_i32 dim 1 : vector<8x256xf32>, i32 -> vector<8x256xf32>
    %c240_i32 = arith.constant 240 : i32
    %60 = vector.broadcast %c240_i32 : i32 to vector<1x256xi32>
    %61 = arith.cmpi slt, %10, %60 : vector<1x256xi32>
    %c1_i32_26 = arith.constant 1 : i32
    %62 = vector.broadcast %c1_i32_26 : i32 to vector<1x256xi32>
    %63 = arith.cmpi sge, %11, %62 : vector<1x256xi32>
    %64 = arith.andi %61, %63 : vector<1x256xi1>
    %cst_27 = arith.constant 0.000000e+00 : f32
    %65 = vector.shape_cast %64 : vector<1x256xi1> to vector<1x256xi1>
    %66 = vector.broadcast %65 : vector<1x256xi1> to vector<8x256xi1>
    %67 = vector.broadcast %cst_27 : f32 to vector<8x256xf32>
    %68 = arith.select %66, %59, %67 : vector<8x256xi1>, vector<8x256xf32>
    %c48 = arith.constant 48 : index
    %c0_28 = arith.constant 0 : index
    %69 = vector.load %arg9[%c48, %c0_28] : memref<72x256xf32, #tpu.memory_space<vmem>>, vector<8x256xf32>
    tpu.vector_store %arg9[%c48, %c0_28], %68 {strides = array<i32>} : memref<72x256xf32, #tpu.memory_space<vmem>>, vector<8x256xf32>,
    %c240_i32_29 = arith.constant 240 : i32
    %70 = tpu.dynamic_rotate %9 by %c240_i32_29 dim 1 : vector<8x256xf32>, i32 -> vector<8x256xf32>
    %c240_i32_30 = arith.constant 240 : i32
    %71 = vector.broadcast %c240_i32_30 : i32 to vector<1x256xi32>
    %72 = arith.cmpi slt, %10, %71 : vector<1x256xi32>
    %cst_31 = arith.constant 0.000000e+00 : f32
    %73 = vector.shape_cast %72 : vector<1x256xi1> to vector<1x256xi1>
    %74 = vector.broadcast %73 : vector<1x256xi1> to vector<8x256xi1>
    %75 = vector.broadcast %cst_31 : f32 to vector<8x256xf32>
    %76 = arith.select %74, %70, %75 : vector<8x256xi1>, vector<8x256xf32>
    %c56 = arith.constant 56 : index
    %c0_32 = arith.constant 0 : index
    %77 = vector.load %arg9[%c56, %c0_32] : memref<72x256xf32, #tpu.memory_space<vmem>>, vector<8x256xf32>
    tpu.vector_store %arg9[%c56, %c0_32], %76 {strides = array<i32>} : memref<72x256xf32, #tpu.memory_space<vmem>>, vector<8x256xf32>,
    %c239_i32 = arith.constant 239 : i32
    %78 = tpu.dynamic_rotate %9 by %c239_i32 dim 1 : vector<8x256xf32>, i32 -> vector<8x256xf32>
    %c240_i32_33 = arith.constant 240 : i32
    %79 = vector.broadcast %c240_i32_33 : i32 to vector<1x256xi32>
    %80 = arith.cmpi slt, %10, %79 : vector<1x256xi32>
    %c14_i32_34 = arith.constant 14 : i32
    %81 = vector.broadcast %c14_i32_34 : i32 to vector<1x256xi32>
    %82 = arith.cmpi sle, %11, %81 : vector<1x256xi32>
    %83 = arith.andi %80, %82 : vector<1x256xi1>
    %cst_35 = arith.constant 0.000000e+00 : f32
    %84 = vector.shape_cast %83 : vector<1x256xi1> to vector<1x256xi1>
    %85 = vector.broadcast %84 : vector<1x256xi1> to vector<8x256xi1>
    %86 = vector.broadcast %cst_35 : f32 to vector<8x256xf32>
    %87 = arith.select %85, %78, %86 : vector<8x256xi1>, vector<8x256xf32>
    %c64 = arith.constant 64 : index
    %c0_36 = arith.constant 0 : index
    %88 = vector.load %arg9[%c64, %c0_36] : memref<72x256xf32, #tpu.memory_space<vmem>>, vector<8x256xf32>
    tpu.vector_store %arg9[%c64, %c0_36], %87 {strides = array<i32>} : memref<72x256xf32, #tpu.memory_space<vmem>>, vector<8x256xf32>,
    %c0_37 = arith.constant 0 : index
    %c0_38 = arith.constant 0 : index
    %89 = vector.load %arg5[%c0_37, %c0_38] : memref<8x72xf32, #tpu.memory_space<vmem>>, vector<8x72xf32>
    %c0_39 = arith.constant 0 : index
    %c0_40 = arith.constant 0 : index
    %90 = vector.load %arg9[%c0_39, %c0_40] : memref<72x256xf32, #tpu.memory_space<vmem>>, vector<72x256xf32>
    %cst_41 = arith.constant dense<0.000000e+00> : vector<8x256xf32>
    %91 = tpu.matmul %89, %90, %cst_41 {dimension_numbers = #tpu.dot_dimension_numbers<[1], [0], [0], [1], [0, 0, 1, 1], [], []>} : vector<8x72xf32>, vector<72x256xf32>, vector<8x256xf32> -> vector<8x256xf32>
    %c0_42 = arith.constant 0 : index
    %c0_43 = arith.constant 0 : index
    %c0_44 = arith.constant 0 : index
    %92 = vector.load %arg6[%c0_42, %c0_43, %c0_44] : memref<1x8x256xf32, #tpu.memory_space<vmem>>, vector<1x8x256xf32>
    %93 = vector.shape_cast %92 : vector<1x8x256xf32> to vector<8x256xf32>
    %94 = vector.shape_cast %91 : vector<8x256xf32> to vector<1x8x256xf32>
    tpu.vector_store %arg6[%c0_42, %c0_43, %c0_44], %94 {strides = array<i32>} : memref<1x8x256xf32, #tpu.memory_space<vmem>>, vector<1x8x256xf32>,
    %cst_45 = arith.constant dense<0.000000e+00> : vector<8xf32>
    %95 = vector.multi_reduction <add>, %91, %cst_45 [1] : vector<8x256xf32> to vector<8xf32>
    %96 = vector.shape_cast %95 : vector<8xf32> to vector<8x1xf32>
    %c0_46 = arith.constant 0 : index
    %c0_47 = arith.constant 0 : index
    %c0_48 = arith.constant 0 : index
    %97 = vector.load %arg7[%c0_46, %c0_47, %c0_48] : memref<1x8x1xf32, #tpu.memory_space<vmem>>, vector<1x8x1xf32>
    %98 = vector.shape_cast %97 : vector<1x8x1xf32> to vector<8x1xf32>
    %99 = vector.shape_cast %96 : vector<8x1xf32> to vector<1x8x1xf32>
    tpu.vector_store %arg7[%c0_46, %c0_47, %c0_48], %99 {strides = array<i32>} : memref<1x8x1xf32, #tpu.memory_space<vmem>>, vector<1x8x1xf32>,
    %100 = arith.mulf %91, %91 : vector<8x256xf32>
    %cst_49 = arith.constant dense<0.000000e+00> : vector<8xf32>
    %101 = vector.multi_reduction <add>, %100, %cst_49 [1] : vector<8x256xf32> to vector<8xf32>
    %102 = vector.shape_cast %101 : vector<8xf32> to vector<8x1xf32>
    %c0_50 = arith.constant 0 : index
    %c0_51 = arith.constant 0 : index
    %c0_52 = arith.constant 0 : index
    %103 = vector.load %arg8[%c0_50, %c0_51, %c0_52] : memref<1x8x1xf32, #tpu.memory_space<vmem>>, vector<1x8x1xf32>
    %104 = vector.shape_cast %103 : vector<1x8x1xf32> to vector<8x1xf32>
    %105 = vector.shape_cast %102 : vector<8x1xf32> to vector<1x8x1xf32>
    tpu.vector_store %arg8[%c0_50, %c0_51, %c0_52], %105 {strides = array<i32>} : memref<1x8x1xf32, #tpu.memory_space<vmem>>, vector<1x8x1xf32>,
    return
  }
  func.func @transform_0(%arg0: i32) -> (i32, i32, i32) {
    %c0_i32 = arith.constant 0 : i32
    %c0_i32_0 = arith.constant 0 : i32
    %c0_i32_1 = arith.constant 0 : i32
    return %arg0, %c0_i32, %c0_i32_0 : i32, i32, i32
  }
  func.func @transform_1(%arg0: i32) -> (i32, i32) {
    %c0_i32 = arith.constant 0 : i32
    %c0_i32_0 = arith.constant 0 : i32
    %c0_i32_1 = arith.constant 0 : i32
    return %c0_i32, %c0_i32_0 : i32, i32
  }
  func.func @transform_2(%arg0: i32) -> (i32, i32) {
    %c0_i32 = arith.constant 0 : i32
    %c0_i32_0 = arith.constant 0 : i32
    %c0_i32_1 = arith.constant 0 : i32
    return %c0_i32, %c0_i32_0 : i32, i32
  }
  func.func @transform_3(%arg0: i32) -> (i32, i32) {
    %c0_i32 = arith.constant 0 : i32
    %c0_i32_0 = arith.constant 0 : i32
    %c0_i32_1 = arith.constant 0 : i32
    return %c0_i32, %c0_i32_0 : i32, i32
  }
  func.func @transform_4(%arg0: i32) -> (i32, i32) {
    %c0_i32 = arith.constant 0 : i32
    %c0_i32_0 = arith.constant 0 : i32
    %c0_i32_1 = arith.constant 0 : i32
    return %c0_i32, %c0_i32_0 : i32, i32
  }
  func.func @transform_5(%arg0: i32) -> (i32, i32, i32) {
    %c0_i32 = arith.constant 0 : i32
    %c0_i32_0 = arith.constant 0 : i32
    %c0_i32_1 = arith.constant 0 : i32
    return %arg0, %c0_i32, %c0_i32_0 : i32, i32, i32
  }
  func.func @transform_6(%arg0: i32) -> (i32, i32, i32) {
    %c0_i32 = arith.constant 0 : i32
    %c0_i32_0 = arith.constant 0 : i32
    %c0_i32_1 = arith.constant 0 : i32
    return %arg0, %c0_i32, %c0_i32_0 : i32, i32, i32
  }
  func.func @transform_7(%arg0: i32) -> (i32, i32, i32) {
    %c0_i32 = arith.constant 0 : i32
    %c0_i32_0 = arith.constant 0 : i32
    %c0_i32_1 = arith.constant 0 : i32
    return %arg0, %c0_i32, %c0_i32_0 : i32, i32, i32
  }
}

module attributes {stable_mosaic.version = 11 : i64} {
  func.func @_bn_relu_kernel(%arg0: i32, %arg1: memref<1x8x256xf32, #tpu.memory_space<vmem>>, %arg2: memref<8x1xf32, #tpu.memory_space<vmem>>, %arg3: memref<8x1xf32, #tpu.memory_space<vmem>>, %arg4: memref<1x8x256xf32, #tpu.memory_space<vmem>>) attributes {dimension_semantics = [#tpu.dimension_semantics<parallel>], iteration_bounds = array<i64: 2>, scalar_prefetch = 0 : i64, scratch_operands = 0 : i64, tpu.core_type = #tpu.core_type<tc>, window_params = [{transform_indices = @transform_0, window_bounds = array<i64: 1, 8, 256>}, {pipeline_mode = #tpu.pipeline_mode<synchronous>, transform_indices = @transform_1, window_bounds = array<i64: 8, 1>}, {pipeline_mode = #tpu.pipeline_mode<synchronous>, transform_indices = @transform_2, window_bounds = array<i64: 8, 1>}, {transform_indices = @transform_3, window_bounds = array<i64: 1, 8, 256>}]} {
    %c0 = arith.constant 0 : index
    %c0_0 = arith.constant 0 : index
    %c0_1 = arith.constant 0 : index
    %0 = vector.load %arg1[%c0, %c0_0, %c0_1] : memref<1x8x256xf32, #tpu.memory_space<vmem>>, vector<1x8x256xf32>
    %1 = vector.shape_cast %0 : vector<1x8x256xf32> to vector<8x256xf32>
    %c0_2 = arith.constant 0 : index
    %c0_3 = arith.constant 0 : index
    %2 = vector.load %arg2[%c0_2, %c0_3] : memref<8x1xf32, #tpu.memory_space<vmem>>, vector<8x1xf32>
    %3 = vector.broadcast %2 : vector<8x1xf32> to vector<8x256xf32>
    %4 = arith.mulf %1, %3 : vector<8x256xf32>
    %c0_4 = arith.constant 0 : index
    %c0_5 = arith.constant 0 : index
    %5 = vector.load %arg3[%c0_4, %c0_5] : memref<8x1xf32, #tpu.memory_space<vmem>>, vector<8x1xf32>
    %6 = vector.broadcast %5 : vector<8x1xf32> to vector<8x256xf32>
    %7 = arith.addf %4, %6 : vector<8x256xf32>
    %cst = arith.constant 0.000000e+00 : f32
    %8 = vector.broadcast %cst : f32 to vector<8x256xf32>
    %9 = arith.maximumf %7, %8 : vector<8x256xf32>
    %c0_6 = arith.constant 0 : index
    %c0_7 = arith.constant 0 : index
    %c0_8 = arith.constant 0 : index
    %10 = vector.load %arg4[%c0_6, %c0_7, %c0_8] : memref<1x8x256xf32, #tpu.memory_space<vmem>>, vector<1x8x256xf32>
    %11 = vector.shape_cast %10 : vector<1x8x256xf32> to vector<8x256xf32>
    %12 = vector.shape_cast %9 : vector<8x256xf32> to vector<1x8x256xf32>
    tpu.vector_store %arg4[%c0_6, %c0_7, %c0_8], %12 {strides = array<i32>} : memref<1x8x256xf32, #tpu.memory_space<vmem>>, vector<1x8x256xf32>,
    return
  }
  func.func @transform_0(%arg0: i32) -> (i32, i32, i32) {
    %c0_i32 = arith.constant 0 : i32
    %c0_i32_0 = arith.constant 0 : i32
    %c0_i32_1 = arith.constant 0 : i32
    return %arg0, %c0_i32, %c0_i32_0 : i32, i32, i32
  }
  func.func @transform_1(%arg0: i32) -> (i32, i32) {
    %c0_i32 = arith.constant 0 : i32
    %c0_i32_0 = arith.constant 0 : i32
    %c0_i32_1 = arith.constant 0 : i32
    return %c0_i32, %c0_i32_0 : i32, i32
  }
  func.func @transform_2(%arg0: i32) -> (i32, i32) {
    %c0_i32 = arith.constant 0 : i32
    %c0_i32_0 = arith.constant 0 : i32
    %c0_i32_1 = arith.constant 0 : i32
    return %c0_i32, %c0_i32_0 : i32, i32
  }
  func.func @transform_3(%arg0: i32) -> (i32, i32, i32) {
    %c0_i32 = arith.constant 0 : i32
    %c0_i32_0 = arith.constant 0 : i32
    %c0_i32_1 = arith.constant 0 : i32
    return %arg0, %c0_i32, %c0_i32_0 : i32, i32, i32
  }
}

module attributes {stable_mosaic.version = 11 : i64} {
  func.func @_conv3x3_fused_kernel(%arg0: i32, %arg1: memref<1x4x256xf32, #tpu.memory_space<vmem>>, %arg2: memref<1x256xi32, #tpu.memory_space<vmem>>, %arg3: memref<8x36xf32, #tpu.memory_space<vmem>>, %arg4: memref<1x8x256xf32, #tpu.memory_space<vmem>>, %arg5: memref<1x8x1xf32, #tpu.memory_space<vmem>>, %arg6: memref<1x8x1xf32, #tpu.memory_space<vmem>>, %arg7: memref<36x256xf32, #tpu.memory_space<vmem>>) attributes {dimension_semantics = [#tpu.dimension_semantics<parallel>], iteration_bounds = array<i64: 2>, scalar_prefetch = 0 : i64, scratch_operands = 1 : i64, tpu.core_type = #tpu.core_type<tc>, window_params = [{transform_indices = @transform_0, window_bounds = array<i64: 1, 4, 256>}, {pipeline_mode = #tpu.pipeline_mode<synchronous>, transform_indices = @transform_1, window_bounds = array<i64: 1, 256>}, {pipeline_mode = #tpu.pipeline_mode<synchronous>, transform_indices = @transform_2, window_bounds = array<i64: 8, 36>}, {transform_indices = @transform_3, window_bounds = array<i64: 1, 8, 256>}, {transform_indices = @transform_4, window_bounds = array<i64: 1, 8, 1>}, {transform_indices = @transform_5, window_bounds = array<i64: 1, 8, 1>}]} {
    %c0 = arith.constant 0 : index
    %c0_0 = arith.constant 0 : index
    %c0_1 = arith.constant 0 : index
    %0 = vector.load %arg1[%c0, %c0_0, %c0_1] : memref<1x4x256xf32, #tpu.memory_space<vmem>>, vector<1x4x256xf32>
    %1 = vector.shape_cast %0 : vector<1x4x256xf32> to vector<4x256xf32>
    %2 = tpu.iota {dimensions = array<i32: 1>} : vector<1x256xi32>
    %c0_2 = arith.constant 0 : index
    %c0_3 = arith.constant 0 : index
    %3 = vector.load %arg2[%c0_2, %c0_3] : memref<1x256xi32, #tpu.memory_space<vmem>>, vector<1x256xi32>
    %c17_i32 = arith.constant 17 : i32
    %4 = tpu.dynamic_rotate %1 by %c17_i32 dim 1 : vector<4x256xf32>, i32 -> vector<4x256xf32>
    %c16_i32 = arith.constant 16 : i32
    %5 = vector.broadcast %c16_i32 : i32 to vector<1x256xi32>
    %6 = arith.cmpi sge, %2, %5 : vector<1x256xi32>
    %c1_i32 = arith.constant 1 : i32
    %7 = vector.broadcast %c1_i32 : i32 to vector<1x256xi32>
    %8 = arith.cmpi sge, %3, %7 : vector<1x256xi32>
    %9 = arith.andi %6, %8 : vector<1x256xi1>
    %cst = arith.constant 0.000000e+00 : f32
    %10 = vector.shape_cast %9 : vector<1x256xi1> to vector<1x256xi1>
    %11 = vector.broadcast %10 : vector<1x256xi1> to vector<4x256xi1>
    %12 = vector.broadcast %cst : f32 to vector<4x256xf32>
    %13 = arith.select %11, %4, %12 : vector<4x256xi1>, vector<4x256xf32>
    %c0_4 = arith.constant 0 : index
    %c0_5 = arith.constant 0 : index
    %14 = vector.load %arg7[%c0_4, %c0_5] : memref<36x256xf32, #tpu.memory_space<vmem>>, vector<4x256xf32>
    tpu.vector_store %arg7[%c0_4, %c0_5], %13 {strides = array<i32>} : memref<36x256xf32, #tpu.memory_space<vmem>>, vector<4x256xf32>,
    %c16_i32_6 = arith.constant 16 : i32
    %15 = tpu.dynamic_rotate %1 by %c16_i32_6 dim 1 : vector<4x256xf32>, i32 -> vector<4x256xf32>
    %c16_i32_7 = arith.constant 16 : i32
    %16 = vector.broadcast %c16_i32_7 : i32 to vector<1x256xi32>
    %17 = arith.cmpi sge, %2, %16 : vector<1x256xi32>
    %cst_8 = arith.constant 0.000000e+00 : f32
    %18 = vector.shape_cast %17 : vector<1x256xi1> to vector<1x256xi1>
    %19 = vector.broadcast %18 : vector<1x256xi1> to vector<4x256xi1>
    %20 = vector.broadcast %cst_8 : f32 to vector<4x256xf32>
    %21 = arith.select %19, %15, %20 : vector<4x256xi1>, vector<4x256xf32>
    %c4 = arith.constant 4 : index
    %c0_9 = arith.constant 0 : index
    %22 = vector.load %arg7[%c4, %c0_9] : memref<36x256xf32, #tpu.memory_space<vmem>>, vector<4x256xf32>
    tpu.vector_store %arg7[%c4, %c0_9], %21 {strides = array<i32>} : memref<36x256xf32, #tpu.memory_space<vmem>>, vector<4x256xf32>,
    %c15_i32 = arith.constant 15 : i32
    %23 = tpu.dynamic_rotate %1 by %c15_i32 dim 1 : vector<4x256xf32>, i32 -> vector<4x256xf32>
    %c16_i32_10 = arith.constant 16 : i32
    %24 = vector.broadcast %c16_i32_10 : i32 to vector<1x256xi32>
    %25 = arith.cmpi sge, %2, %24 : vector<1x256xi32>
    %c14_i32 = arith.constant 14 : i32
    %26 = vector.broadcast %c14_i32 : i32 to vector<1x256xi32>
    %27 = arith.cmpi sle, %3, %26 : vector<1x256xi32>
    %28 = arith.andi %25, %27 : vector<1x256xi1>
    %cst_11 = arith.constant 0.000000e+00 : f32
    %29 = vector.shape_cast %28 : vector<1x256xi1> to vector<1x256xi1>
    %30 = vector.broadcast %29 : vector<1x256xi1> to vector<4x256xi1>
    %31 = vector.broadcast %cst_11 : f32 to vector<4x256xf32>
    %32 = arith.select %30, %23, %31 : vector<4x256xi1>, vector<4x256xf32>
    %c8 = arith.constant 8 : index
    %c0_12 = arith.constant 0 : index
    %33 = vector.load %arg7[%c8, %c0_12] : memref<36x256xf32, #tpu.memory_space<vmem>>, vector<4x256xf32>
    tpu.vector_store %arg7[%c8, %c0_12], %32 {strides = array<i32>} : memref<36x256xf32, #tpu.memory_space<vmem>>, vector<4x256xf32>,
    %c1_i32_13 = arith.constant 1 : i32
    %34 = tpu.dynamic_rotate %1 by %c1_i32_13 dim 1 : vector<4x256xf32>, i32 -> vector<4x256xf32>
    %c1_i32_14 = arith.constant 1 : i32
    %35 = vector.broadcast %c1_i32_14 : i32 to vector<1x256xi32>
    %36 = arith.cmpi sge, %3, %35 : vector<1x256xi32>
    %cst_15 = arith.constant 0.000000e+00 : f32
    %37 = vector.shape_cast %36 : vector<1x256xi1> to vector<1x256xi1>
    %38 = vector.broadcast %37 : vector<1x256xi1> to vector<4x256xi1>
    %39 = vector.broadcast %cst_15 : f32 to vector<4x256xf32>
    %40 = arith.select %38, %34, %39 : vector<4x256xi1>, vector<4x256xf32>
    %c12 = arith.constant 12 : index
    %c0_16 = arith.constant 0 : index
    %41 = vector.load %arg7[%c12, %c0_16] : memref<36x256xf32, #tpu.memory_space<vmem>>, vector<4x256xf32>
    tpu.vector_store %arg7[%c12, %c0_16], %40 {strides = array<i32>} : memref<36x256xf32, #tpu.memory_space<vmem>>, vector<4x256xf32>,
    %c16 = arith.constant 16 : index
    %c0_17 = arith.constant 0 : index
    %42 = vector.load %arg7[%c16, %c0_17] : memref<36x256xf32, #tpu.memory_space<vmem>>, vector<4x256xf32>
    tpu.vector_store %arg7[%c16, %c0_17], %1 {strides = array<i32>} : memref<36x256xf32, #tpu.memory_space<vmem>>, vector<4x256xf32>,
    %c255_i32 = arith.constant 255 : i32
    %43 = tpu.dynamic_rotate %1 by %c255_i32 dim 1 : vector<4x256xf32>, i32 -> vector<4x256xf32>
    %c14_i32_18 = arith.constant 14 : i32
    %44 = vector.broadcast %c14_i32_18 : i32 to vector<1x256xi32>
    %45 = arith.cmpi sle, %3, %44 : vector<1x256xi32>
    %cst_19 = arith.constant 0.000000e+00 : f32
    %46 = vector.shape_cast %45 : vector<1x256xi1> to vector<1x256xi1>
    %47 = vector.broadcast %46 : vector<1x256xi1> to vector<4x256xi1>
    %48 = vector.broadcast %cst_19 : f32 to vector<4x256xf32>
    %49 = arith.select %47, %43, %48 : vector<4x256xi1>, vector<4x256xf32>
    %c20 = arith.constant 20 : index
    %c0_20 = arith.constant 0 : index
    %50 = vector.load %arg7[%c20, %c0_20] : memref<36x256xf32, #tpu.memory_space<vmem>>, vector<4x256xf32>
    tpu.vector_store %arg7[%c20, %c0_20], %49 {strides = array<i32>} : memref<36x256xf32, #tpu.memory_space<vmem>>, vector<4x256xf32>,
    %c241_i32 = arith.constant 241 : i32
    %51 = tpu.dynamic_rotate %1 by %c241_i32 dim 1 : vector<4x256xf32>, i32 -> vector<4x256xf32>
    %c240_i32 = arith.constant 240 : i32
    %52 = vector.broadcast %c240_i32 : i32 to vector<1x256xi32>
    %53 = arith.cmpi slt, %2, %52 : vector<1x256xi32>
    %c1_i32_21 = arith.constant 1 : i32
    %54 = vector.broadcast %c1_i32_21 : i32 to vector<1x256xi32>
    %55 = arith.cmpi sge, %3, %54 : vector<1x256xi32>
    %56 = arith.andi %53, %55 : vector<1x256xi1>
    %cst_22 = arith.constant 0.000000e+00 : f32
    %57 = vector.shape_cast %56 : vector<1x256xi1> to vector<1x256xi1>
    %58 = vector.broadcast %57 : vector<1x256xi1> to vector<4x256xi1>
    %59 = vector.broadcast %cst_22 : f32 to vector<4x256xf32>
    %60 = arith.select %58, %51, %59 : vector<4x256xi1>, vector<4x256xf32>
    %c24 = arith.constant 24 : index
    %c0_23 = arith.constant 0 : index
    %61 = vector.load %arg7[%c24, %c0_23] : memref<36x256xf32, #tpu.memory_space<vmem>>, vector<4x256xf32>
    tpu.vector_store %arg7[%c24, %c0_23], %60 {strides = array<i32>} : memref<36x256xf32, #tpu.memory_space<vmem>>, vector<4x256xf32>,
    %c240_i32_24 = arith.constant 240 : i32
    %62 = tpu.dynamic_rotate %1 by %c240_i32_24 dim 1 : vector<4x256xf32>, i32 -> vector<4x256xf32>
    %c240_i32_25 = arith.constant 240 : i32
    %63 = vector.broadcast %c240_i32_25 : i32 to vector<1x256xi32>
    %64 = arith.cmpi slt, %2, %63 : vector<1x256xi32>
    %cst_26 = arith.constant 0.000000e+00 : f32
    %65 = vector.shape_cast %64 : vector<1x256xi1> to vector<1x256xi1>
    %66 = vector.broadcast %65 : vector<1x256xi1> to vector<4x256xi1>
    %67 = vector.broadcast %cst_26 : f32 to vector<4x256xf32>
    %68 = arith.select %66, %62, %67 : vector<4x256xi1>, vector<4x256xf32>
    %c28 = arith.constant 28 : index
    %c0_27 = arith.constant 0 : index
    %69 = vector.load %arg7[%c28, %c0_27] : memref<36x256xf32, #tpu.memory_space<vmem>>, vector<4x256xf32>
    tpu.vector_store %arg7[%c28, %c0_27], %68 {strides = array<i32>} : memref<36x256xf32, #tpu.memory_space<vmem>>, vector<4x256xf32>,
    %c239_i32 = arith.constant 239 : i32
    %70 = tpu.dynamic_rotate %1 by %c239_i32 dim 1 : vector<4x256xf32>, i32 -> vector<4x256xf32>
    %c240_i32_28 = arith.constant 240 : i32
    %71 = vector.broadcast %c240_i32_28 : i32 to vector<1x256xi32>
    %72 = arith.cmpi slt, %2, %71 : vector<1x256xi32>
    %c14_i32_29 = arith.constant 14 : i32
    %73 = vector.broadcast %c14_i32_29 : i32 to vector<1x256xi32>
    %74 = arith.cmpi sle, %3, %73 : vector<1x256xi32>
    %75 = arith.andi %72, %74 : vector<1x256xi1>
    %cst_30 = arith.constant 0.000000e+00 : f32
    %76 = vector.shape_cast %75 : vector<1x256xi1> to vector<1x256xi1>
    %77 = vector.broadcast %76 : vector<1x256xi1> to vector<4x256xi1>
    %78 = vector.broadcast %cst_30 : f32 to vector<4x256xf32>
    %79 = arith.select %77, %70, %78 : vector<4x256xi1>, vector<4x256xf32>
    %c32 = arith.constant 32 : index
    %c0_31 = arith.constant 0 : index
    %80 = vector.load %arg7[%c32, %c0_31] : memref<36x256xf32, #tpu.memory_space<vmem>>, vector<4x256xf32>
    tpu.vector_store %arg7[%c32, %c0_31], %79 {strides = array<i32>} : memref<36x256xf32, #tpu.memory_space<vmem>>, vector<4x256xf32>,
    %c0_32 = arith.constant 0 : index
    %c0_33 = arith.constant 0 : index
    %81 = vector.load %arg3[%c0_32, %c0_33] : memref<8x36xf32, #tpu.memory_space<vmem>>, vector<8x36xf32>
    %c0_34 = arith.constant 0 : index
    %c0_35 = arith.constant 0 : index
    %82 = vector.load %arg7[%c0_34, %c0_35] : memref<36x256xf32, #tpu.memory_space<vmem>>, vector<36x256xf32>
    %cst_36 = arith.constant dense<0.000000e+00> : vector<8x256xf32>
    %83 = tpu.matmul %81, %82, %cst_36 {dimension_numbers = #tpu.dot_dimension_numbers<[1], [0], [0], [1], [0, 0, 1, 1], [], []>} : vector<8x36xf32>, vector<36x256xf32>, vector<8x256xf32> -> vector<8x256xf32>
    %c0_37 = arith.constant 0 : index
    %c0_38 = arith.constant 0 : index
    %c0_39 = arith.constant 0 : index
    %84 = vector.load %arg4[%c0_37, %c0_38, %c0_39] : memref<1x8x256xf32, #tpu.memory_space<vmem>>, vector<1x8x256xf32>
    %85 = vector.shape_cast %84 : vector<1x8x256xf32> to vector<8x256xf32>
    %86 = vector.shape_cast %83 : vector<8x256xf32> to vector<1x8x256xf32>
    tpu.vector_store %arg4[%c0_37, %c0_38, %c0_39], %86 {strides = array<i32>} : memref<1x8x256xf32, #tpu.memory_space<vmem>>, vector<1x8x256xf32>,
    %cst_40 = arith.constant dense<0.000000e+00> : vector<8xf32>
    %87 = vector.multi_reduction <add>, %83, %cst_40 [1] : vector<8x256xf32> to vector<8xf32>
    %88 = vector.shape_cast %87 : vector<8xf32> to vector<8x1xf32>
    %c0_41 = arith.constant 0 : index
    %c0_42 = arith.constant 0 : index
    %c0_43 = arith.constant 0 : index
    %89 = vector.load %arg5[%c0_41, %c0_42, %c0_43] : memref<1x8x1xf32, #tpu.memory_space<vmem>>, vector<1x8x1xf32>
    %90 = vector.shape_cast %89 : vector<1x8x1xf32> to vector<8x1xf32>
    %91 = vector.shape_cast %88 : vector<8x1xf32> to vector<1x8x1xf32>
    tpu.vector_store %arg5[%c0_41, %c0_42, %c0_43], %91 {strides = array<i32>} : memref<1x8x1xf32, #tpu.memory_space<vmem>>, vector<1x8x1xf32>,
    %92 = arith.mulf %83, %83 : vector<8x256xf32>
    %cst_44 = arith.constant dense<0.000000e+00> : vector<8xf32>
    %93 = vector.multi_reduction <add>, %92, %cst_44 [1] : vector<8x256xf32> to vector<8xf32>
    %94 = vector.shape_cast %93 : vector<8xf32> to vector<8x1xf32>
    %c0_45 = arith.constant 0 : index
    %c0_46 = arith.constant 0 : index
    %c0_47 = arith.constant 0 : index
    %95 = vector.load %arg6[%c0_45, %c0_46, %c0_47] : memref<1x8x1xf32, #tpu.memory_space<vmem>>, vector<1x8x1xf32>
    %96 = vector.shape_cast %95 : vector<1x8x1xf32> to vector<8x1xf32>
    %97 = vector.shape_cast %94 : vector<8x1xf32> to vector<1x8x1xf32>
    tpu.vector_store %arg6[%c0_45, %c0_46, %c0_47], %97 {strides = array<i32>} : memref<1x8x1xf32, #tpu.memory_space<vmem>>, vector<1x8x1xf32>,
    return
  }
  func.func @transform_0(%arg0: i32) -> (i32, i32, i32) {
    %c0_i32 = arith.constant 0 : i32
    %c0_i32_0 = arith.constant 0 : i32
    %c0_i32_1 = arith.constant 0 : i32
    return %arg0, %c0_i32, %c0_i32_0 : i32, i32, i32
  }
  func.func @transform_1(%arg0: i32) -> (i32, i32) {
    %c0_i32 = arith.constant 0 : i32
    %c0_i32_0 = arith.constant 0 : i32
    %c0_i32_1 = arith.constant 0 : i32
    return %c0_i32, %c0_i32_0 : i32, i32
  }
  func.func @transform_2(%arg0: i32) -> (i32, i32) {
    %c0_i32 = arith.constant 0 : i32
    %c0_i32_0 = arith.constant 0 : i32
    %c0_i32_1 = arith.constant 0 : i32
    return %c0_i32, %c0_i32_0 : i32, i32
  }
  func.func @transform_3(%arg0: i32) -> (i32, i32, i32) {
    %c0_i32 = arith.constant 0 : i32
    %c0_i32_0 = arith.constant 0 : i32
    %c0_i32_1 = arith.constant 0 : i32
    return %arg0, %c0_i32, %c0_i32_0 : i32, i32, i32
  }
  func.func @transform_4(%arg0: i32) -> (i32, i32, i32) {
    %c0_i32 = arith.constant 0 : i32
    %c0_i32_0 = arith.constant 0 : i32
    %c0_i32_1 = arith.constant 0 : i32
    return %arg0, %c0_i32, %c0_i32_0 : i32, i32, i32
  }
  func.func @transform_5(%arg0: i32) -> (i32, i32, i32) {
    %c0_i32 = arith.constant 0 : i32
    %c0_i32_0 = arith.constant 0 : i32
    %c0_i32_1 = arith.constant 0 : i32
    return %arg0, %c0_i32, %c0_i32_0 : i32, i32, i32
  }
}

</mosaic_0001>

<bundles_post_ra>
// kernel: double_conv.5
= control target key start
LH: loop header
LB: loop body
LE: loop exit
PB: predicated region body
PF: predicated region fallthrough
CT: control target
= control target key end

     0   :  { %s300_s12 = smov 0   ;;  %s323_s0 = inlined_call_operand.vmem [shape: f32[2,8,256], index: 0, kind: input, shape index: {}]   ;;  %s324_s1 = inlined_call_operand.vmem [shape: f32[8,1], index: 1, kind: input, shape index: {}]   ;;  %s325_s2 = inlined_call_operand.vmem [shape: f32[8,1], index: 2, kind: input, shape index: {}]   ;;  %s326_s3 = inlined_call_operand.vmem [shape: f32[2,8,256], index: 3, kind: output, shape index: {}]  }
   0x1 LB: > { %s248_s13 = sadd.s32 4294967295, %s277_s12   ;;  %p252_p0 = scmp.ge.s32.totalorder %s277_s12, 1  ;;  %s277_s12 = sphi %s300_s12, %s13_s12  }
   0x2   : > { %p137_p1 = scmp.lt.s32.totalorder %s277_s12, 3 }
   0x4   : > { %p138_p2 = pnand %p252_p0, %p137_p1 }
   0x5   : > { %p161_p3 = scmp.lt.s32.totalorder (!%p138_p2), %s248_s13, 1 }
   0x6   : > { %141 = sbr.rel (%p138_p2) target bundleno = 142 (0x8e), region = 32 }
   0xb   : > { %v173_v0 = vld [vmem:[%s324_s1] sm:$0xff]  ;;  %v279_v1 = vmov 0   ;;  %s328_s13 = smov (!%p161_p3, %s248_s13), 1 }
   0xc   : > { %270 = vset.pattern.permute.xlu0 %v279_v1  ;;  %v181_v2 = vld [vmem:[%s325_s2] sm:$0xff]  ;;  %s259_s18 = sshll.u32 %s328_s13, 4 }
   0xd   : > { %176 = vperm.xlu0 %270, %v173_v0   ;;  %s165_s21 = scalar_lea.vmem %s323_s0, %s259_s18  ;;  %s170_s24 = scalar_lea.vmem %s326_s3, %s259_s18 }
   0xe   : > { %v171_v4 = vld [vmem:[%s165_s21] sm:$0xff]  ;;  %v172_v5 = vld [vmem:[%s165_s21 + $0x8] sm:$0xff] }
  0x15   : > { %184 = vperm.xlu0 %270, %v181_v2  }
  0x7f   : > { %v177_v3 = vpop.permute.xlu0 %176 }
  0x80   : > { %v179_v6 = vmul.f32 %v177_v3, %v171_v4  ;;  %v180_v7 = vmul.f32 %v177_v3, %v172_v5 }
  0x87   : > { %v185_v8 = vpop.permute.xlu0 %184 }
  0x88   : > { %v187_v9 = vadd.f32 %v185_v8, %v179_v6  ;;  %v188_v10 = vadd.f32 %v185_v8, %v180_v7 }
  0x8a   : > { %v189_v11 = vmax.f32 %v187_v9, 0.0  ;;  %v190_v12 = vmax.f32 %v188_v10, 0.0 }
  0x8c   : > { %191 = vst [vmem:[%s170_s24] sm:$0xff] %v189_v11 }
  0x8d   : > { %192 = vst [vmem:[%s170_s24 + $0x8] sm:$0xff] %v190_v12 }
  0x8e PF: > { %s13_s12 = sadd.s32 1, %s277_s12  }
  0x8f   : > { %p10_p4 = scmp.ge.s32.totalorder %s13_s12, 4  }
  0x91   :  { %12 = sbr.rel (!%p10_p4) target bundleno = 1 (0x1), region = 62 }

// kernel: double_conv.4
= control target key start
LH: loop header
LB: loop body
LE: loop exit
PB: predicated region body
PF: predicated region fallthrough
CT: control target
= control target key end

     0   :  { %s773_s24 = smov 0   ;;  %s902_s0 = inlined_call_operand.vmem [shape: f32[2,8,256], index: 0, kind: input, shape index: {}]   ;;  %s903_s1 = inlined_call_operand.vmem [shape: s32[1,256], index: 1, kind: input, shape index: {}]   ;;  %s904_s2 = inlined_call_operand.vmem [shape: f32[8,1], index: 2, kind: input, shape index: {}]   ;;  %s905_s3 = inlined_call_operand.vmem [shape: f32[8,1], index: 3, kind: input, shape index: {}]   ;;  %s906_s4 = inlined_call_operand.vmem [shape: f32[8,72], index: 4, kind: input, shape index: {}]   ;;  %s907_s5 = inlined_call_operand.vmem [shape: f32[2,8,256], index: 5, kind: output, shape index: {0}]   ;;  %s908_s6 = inlined_call_operand.vmem [shape: f32[2,8,1], index: 6, kind: output, shape index: {1}]   ;;  %s909_s7 = inlined_call_operand.vmem [shape: f32[2,8,1], index: 7, kind: output, shape index: {2}]  }
   0x1 LB: > { %s667_s25 = sadd.s32 4294967295, %s722_s24   ;;  %p671_p0 = scmp.ge.s32.totalorder %s722_s24, 1  ;;  %s722_s24 = sphi %s773_s24, %s18_s24  }
   0x2   : > { %p242_p1 = scmp.lt.s32.totalorder %s722_s24, 3 }
   0x4   : > { %p243_p2 = pnand %p671_p0, %p242_p1 }
   0x5   : > { %p282_p3 = scmp.lt.s32.totalorder (!%p243_p2), %s667_s25, 1  ;;  %s725_s11 = smov (!%p243_p2), 113  }
   0x6   : > { %246 = sbr.rel (%p243_p2) target bundleno = 545 (0x221), region = 40  ;;  %s726_s12 = smov (!%p243_p2), 112  }
   0x7   : > { %s727_s13 = smov (!%p243_p2), 111   ;;  %s728_s14 = smov (!%p243_p2), 127  }
   0x8   : > { %s729_s15 = smov (!%p243_p2), 15   ;;  %s730_s16 = smov (!%p243_p2), 16  }
   0x9   : > { %s731_s17 = smov (!%p243_p2), 1   ;;  %s732_s18 = smov (!%p243_p2), 17  }
   0xb   : > { %v302_v0 = vld [vmem:[%s904_s2] sm:$0xff]  ;;  %v724_v1 = vmov 0   ;;  %s919_s25 = smov (!%p282_p3, %s667_s25), 1  ;;  %v320_v14 = vlaneseq }
   0xc   : > { %715 = vset.pattern.permute.xlu0 %v724_v1  ;;  %v310_v2 = vld [vmem:[%s905_s3] sm:$0xff]  ;;  %s682_s30 = sshll.u32 %s919_s25, 4  ;;  %s676_s28 = sshll.u32 %s919_s25, 3 }
   0xd   : > { %305 = vperm.xlu0 %715, %v302_v0   ;;  %s286_s10 = scalar_lea.vmem %s902_s0, %s682_s30  ;;  %v323_v13 = vld [vmem:[%s903_s1] sm:$0x3]  ;;  %v820_v16 = vand.u32 127, %v320_v14  ;;  %s291_s27 = scalar_lea.vmem %s907_s5, %s682_s30 }
   0xe   : > { %v300_v4 = vld [vmem:[%s286_s10] sm:$0xff]  ;;  %v301_v8 = vld [vmem:[%s286_s10 + $0x8] sm:$0xff]  ;;  %vm373_vm0 = vcmp.le.s32.totalorder %v323_v13, 14  ;;  %vm333_vm1 = vcmp.ge.s32.totalorder %v323_v13, 1  ;;  %s295_s9 = scalar_lea.vmem %s908_s6, %s676_s28  ;;  %s299_s30 = scalar_lea.vmem %s909_s7, %s676_s28 }
   0xf   : > { %v374_v15 = vsel %vm373_vm0, 1, %v724_v1  ;;  %v322_v18 = vadd.s32 128, %v820_v16  ;;  %v334_v22 = vsel %vm333_vm1, 1, %v724_v1  ;;  %vm459_vm9 = vcmp.lt.s32.totalorder %v820_v16, 111 }
  0x10   : > { %v376_v19 = vperm.slane %v374_v15, 1  ;;  %v375_v20 = vperm.slane %v374_v15, 0  ;;  %v336_v24 = vperm.slane %v334_v22, 1  ;;  %v335_v29 = vperm.slane %v334_v22, 0 }
  0x11   : > { %vm427_vm3 = vcmp.lt.s32.totalorder %v322_v18, 240  ;;  %vm444_vm12 = vcmp.lt.s32.totalorder %v820_v16, 112  ;;  %vm423_vm13 = vcmp.lt.s32.totalorder %v820_v16, 113  ;;  %vm410_vm0 = vcmp.lt.s32.totalorder %v820_v16, 127 }
  0x12   : > { %vm823_vm2 = vcmp.ne.s32.totalorder %v376_v19, 0  ;;  %vm828_vm4 = vcmp.ne.s32.totalorder %v375_v20, 0  ;;  %vm839_vm6 = vcmp.ne.s32.totalorder %v336_v24, 0  ;;  %vm843_vm7 = vcmp.ne.s32.totalorder %v335_v29, 0 }
  0x13   : > { %vm463_vm5 = vmand %vm427_vm3, %vm823_vm2  ;;  %v464_v27 = vsel %vm828_vm4, 1, %v724_v1  ;;  %v430_v36 = vsel %vm843_vm7, 1, %v724_v1  ;;  %vm413_vm1 = vcmp.eq.s32.totalorder %v375_v20, 1  ;;  %v382_v55 = vsel %vm823_vm2, 1, %v724_v1 }
  0x14   : > { %v465_v28 = vsel %vm463_vm5, 1, %v724_v1  ;;  %v466_v32 = vperm.slane %v464_v27, 0  ;;  %vm429_vm8 = vmand %vm427_vm3, %vm839_vm6  ;;  %v432_v43 = vperm.slane %v430_v36, 0  ;;  %vm414_vm5 = vcmp.eq.s32.totalorder %v376_v19, 1 }
  0x15   : > { %313 = vperm.xlu0 %715, %v310_v2   ;;  %v467_v33 = vperm.slane %v465_v28, 0  ;;  %v431_v37 = vsel %vm429_vm8, 1, %v724_v1  ;;  %vm331_vm8 = vcmp.ge.s32.totalorder %v820_v16, 16  ;;  %v384_v59 = vperm.slane %v382_v55, 0 }
  0x16   : > { %vm468_vm10 = vcmp.eq.s32.totalorder %v466_v32, 1  ;;  %v433_v44 = vperm.slane %v431_v37, 0  ;;  %vm434_vm14 = vcmp.eq.s32.totalorder %v432_v43, 1  ;;  %vm355_vm2 = vcmp.lt.s32.totalorder %v820_v16, 16 }
  0x17   : > { %vm469_vm11 = vcmp.eq.s32.totalorder %v467_v33, 1  ;;  %v342_v0 = vsel %vm839_vm6, 1, %v724_v1  ;;  %vm493_vm6 = vcmask 588800  }
  0x18   : > { %vm435_vm15 = vcmp.eq.s32.totalorder %v433_v44, 1 }
  0x7f   : > { %v306_v3 = vpop.permute.xlu0 %305 }
  0x80   : > { %v308_v5 = vmul.f32 %v306_v3, %v300_v4  ;;  %v309_v10 = vmul.f32 %v306_v3, %v301_v8 }
  0x87   : > { %v314_v6 = vpop.permute.xlu0 %313 }
  0x88   : > { %v316_v7 = vadd.f32 %v314_v6, %v308_v5  ;;  %v317_v11 = vadd.f32 %v314_v6, %v309_v10 }
  0x8a   : > { %v796_v9 = vmax.f32 %v316_v7, 0.0  ;;  %v801_v12 = vmax.f32 %v317_v11, 0.0  ;;  %v344_v7 = vperm.slane %v342_v0, 0 }
  0x8c   : > { %419 = vrot.lane.b32.xlu0 %v796_v9, %s725_s11  ;;  %440 = vrot.lane.b32.xlu2 %v796_v9, %s726_s12 }
  0x8d   : > { %455 = vrot.lane.b32.xlu1 %v796_v9, %s727_s13 }
  0x94   : > { %408 = vrot.lane.b32.xlu0 %v801_v12, %s728_s14  ;;  %442 = vrot.lane.b32.xlu2 %v801_v12, %s726_s12 }
  0x95   : > { %457 = vrot.lane.b32.xlu1 %v801_v12, %s727_s13 }
  0x9c   : > { %366 = vrot.lane.b32.xlu0 %v796_v9, %s729_s15  ;;  %406 = vrot.lane.b32.xlu2 %v796_v9, %s728_s14 }
  0x9d   : > { %421 = vrot.lane.b32.xlu1 %v801_v12, %s725_s11 }
  0xa4   : > { %353 = vrot.lane.b32.xlu0 %v801_v12, %s730_s16  ;;  %393 = vrot.lane.b32.xlu2 %v801_v12, %s731_s17 }
  0xa5   : > { %391 = vrot.lane.b32.xlu1 %v796_v9, %s731_s17 }
  0xac   : > { %351 = vrot.lane.b32.xlu2 %v796_v9, %s730_s16 }
  0xad   : > { %368 = vrot.lane.b32.xlu1 %v801_v12, %s729_s15 }
  0xb4   : > { %326 = vrot.lane.b32.xlu2 %v801_v12, %s732_s18 }
  0xb5   : > { %324 = vrot.lane.b32.xlu1 %v796_v9, %s732_s18 }
  0xe6   : > { %v441_v17 = vpop.permute.xlu2 %440 }
  0xee   : > { %v443_v25 = vpop.permute.xlu2 %442 }
  0xef   : > { %v445_v41 = vsel %vm444_vm12, %v441_v17, %v443_v25  ;;  %v446_v42 = vsel %vm444_vm12, %v443_v25, %v441_v17  ;;  %vm370_vm12 = vcmp.lt.s32.totalorder %v820_v16, 15 }
  0xf6   : > { %v407_v40 = vpop.permute.xlu2 %406 }
  0xfe   : > { %v420_v30 = vpop.permute.xlu0 %419  ;;  %v394_v51 = vpop.permute.xlu2 %393 }
  0xff   : > { %v456_v26 = vpop.permute.xlu1 %455 }
 0x106   : > { %v409_v45 = vpop.permute.xlu0 %408  ;;  %v352_v60 = vpop.permute.xlu2 %351 }
 0x107   : > { %v458_v35 = vpop.permute.xlu1 %457  ;;  %v411_v49 = vsel %vm410_vm0, %v407_v40, %v409_v45  ;;  %v412_v50 = vsel %vm410_vm0, %v409_v45, %v407_v40  ;;  %vm346_vm0 = vcmp.eq.s32.totalorder %v344_v7, 1 }
 0x108   : > { %v460_v38 = vsel %vm459_vm9, %v456_v26, %v458_v35  ;;  %v461_v39 = vsel %vm459_vm9, %v458_v35, %v456_v26  ;;  %vm395_vm9 = vcmp.lt.s32.totalorder %v820_v16, 1 }
 0x109   : > { %684 = vmatpush.msk.msra.mxu0 %vm468_vm10, %v460_v38  ;;  %691 = vmatpush.msk.msra.mxu1 %vm469_vm11, %v461_v39  ;;  %vm398_vm10 = vcmp.eq.s32.totalorder %v335_v29, 1  ;;  %vm399_vm11 = vcmp.eq.s32.totalorder %v336_v24, 1 }
 0x10b   : > { %505 = vmatpush.msra.mxu0 %v445_v41  ;;  %692 = vmatpush.msk.msra.mxu1 %vm427_vm3, %v446_v42  ;;  %vm379_vm3 = vmand %vm331_vm8, %vm828_vm4 }
 0x10c   : > { %v381_v54 = vsel %vm379_vm3, 1, %v724_v1  ;;  %vm339_vm4 = vmand %vm331_vm8, %vm843_vm7  ;;  %vm328_vm7 = vcmp.lt.s32.totalorder %v820_v16, 17 }
 0x10d   : > { %v383_v58 = vperm.slane %v381_v54, 0  ;;  %v341_v63 = vsel %vm339_vm4, 1, %v724_v1  ;;  %v474_v1 = vld [vmem:[%s906_s4] sm:$0xff] }
 0x10e   : > { %v367_v52 = vpop.permute.xlu0 %366  ;;  %v343_v6 = vperm.slane %v341_v63, 0  ;;  %v327_v8 = vpop.permute.xlu2 %326 }
 0x10f   : > { %v422_v46 = vpop.permute.xlu1 %421 }
 0x110   : > { %v424_v47 = vsel %vm423_vm13, %v420_v30, %v422_v46  ;;  %v425_v48 = vsel %vm423_vm13, %v422_v46, %v420_v30  ;;  %vm385_vm13 = vcmp.eq.s32.totalorder %v383_v58, 1 }
 0x111   : > { %685 = vmatpush.msk.msra.mxu0 %vm434_vm14, %v424_v47  ;;  %693 = vmatpush.msk.msra.mxu1 %vm435_vm15, %v425_v48  ;;  %vm386_vm14 = vcmp.eq.s32.totalorder %v384_v59, 1  ;;  %vm345_vm15 = vcmp.eq.s32.totalorder %v343_v6, 1 }
 0x113   : > { %686 = vmatpush.msk.msra.mxu0 %vm413_vm1, %v411_v49  ;;  %694 = vmatpush.msk.msra.mxu1 %vm414_vm5, %v412_v50  ;;  %vm542_vm1 = vcmask 7168  }
 0x115   : > { %508 = vmatpush.msra.mxu0 %v796_v9  ;;  %528 = vmatpush.msra.mxu1 %v801_v12 }
 0x116   : > { %v354_v61 = vpop.permute.xlu0 %353 }
 0x117   : > { %v392_v53 = vpop.permute.xlu1 %391  ;;  %v357_v4 = vsel %vm355_vm2, %v354_v61, %v352_v60  ;;  %v356_v5 = vsel %vm355_vm2, %v352_v60, %v354_v61 }
 0x118   : > { %v397_v56 = vsel %vm395_vm9, %v394_v51, %v392_v53  ;;  %v396_v57 = vsel %vm395_vm9, %v392_v53, %v394_v51 }
 0x119   : > { %687 = vmatpush.msk.msra.mxu0 %vm398_vm10, %v397_v56  ;;  %695 = vmatpush.msk.msra.mxu1 %vm399_vm11, %v396_v57 }
 0x11f   : > { %v369_v62 = vpop.permute.xlu1 %368 }
 0x120   : > { %v372_v2 = vsel %vm370_vm12, %v369_v62, %v367_v52  ;;  %v371_v3 = vsel %vm370_vm12, %v367_v52, %v369_v62 }
 0x121   : > { %688 = vmatpush.msk.msra.mxu0 %vm385_vm13, %v372_v2  ;;  %696 = vmatpush.msk.msra.mxu1 %vm386_vm14, %v371_v3 }
 0x123   : > { %689 = vmatpush.msk.msra.mxu0 %vm331_vm8, %v357_v4  ;;  %531 = vmatpush.msra.mxu1 %v356_v5 }
 0x127   : > { %v325_v9 = vpop.permute.xlu1 %324 }
 0x128   : > { %v330_v10 = vsel %vm328_vm7, %v327_v8, %v325_v9  ;;  %v329_v11 = vsel %vm328_vm7, %v325_v9, %v327_v8 }
 0x129   : > { %690 = vmatpush.msk.msra.mxu0 %vm345_vm15, %v330_v10  ;;  %697 = vmatpush.msk.msra.mxu1 %vm346_vm0, %v329_v11 }
 0x12a   : > { %678 = vmatmul.msk.f32.vlgmr.msra.gmra.mxu0 %vm493_vm6, %v474_v1  ;;  %679 = vmatmul.msk.f32.vlgmr.msra.gmra.mxu1 %vm493_vm6, %v474_v1 }
 0x1a7   : > { %v514_v12 = vpop.f32.mrf.mxu0  ;;  %v534_v13 = vpop.f32.mrf.mxu1 }
 0x1a8   : > { %537 = vst [vmem:[%s291_s27] sm:$0xff] %v514_v12  ;;  %v544_v14 = vmul.f32 %v514_v12, %v514_v12  ;;  %v545_v15 = vmul.f32 %v534_v13, %v534_v13  ;;  %v539_v16 = vadd.f32 %v534_v13, %v514_v12 }
 0x1a9   : > { %538 = vst [vmem:[%s291_s27 + $0x8] sm:$0xff] %v534_v13 }
 0x1aa   : > { %540 = vadd.xlane.f32.xlu0 %v539_v16  ;;  %v546_v17 = vadd.f32 %v545_v15, %v544_v14 }
 0x1ac   : > { %547 = vadd.xlane.f32.xlu1 %v546_v17 }
 0x21d   : > { %v541_v18 = vpop.xlane.xlu0 %540 }
 0x21e   : > { %543 = vst.msk [vmem:[%s295_s9] sm:$0xff] %vm542_vm1, %v541_v18 }
 0x21f   : > { %v548_v19 = vpop.xlane.xlu1 %547 }
 0x220   : > { %549 = vst.msk [vmem:[%s299_s30] sm:$0xff] %vm542_vm1, %v548_v19 }
 0x221 PF: > { %s18_s24 = sadd.s32 1, %s722_s24  }
 0x222   : > { %p15_p4 = scmp.ge.s32.totalorder %s18_s24, 4  }
 0x224   :  { %17 = sbr.rel (!%p15_p4) target bundleno = 1 (0x1), region = 94 }

// kernel: double_conv.3
= control target key start
LH: loop header
LB: loop body
LE: loop exit
PB: predicated region body
PF: predicated region fallthrough
CT: control target
= control target key end

     0   :  { %s746_s18 = smov 0   ;;  %s871_s0 = inlined_call_operand.vmem [shape: f32[2,4,256], index: 0, kind: input, shape index: {}]   ;;  %s872_s1 = inlined_call_operand.vmem [shape: s32[1,256], index: 1, kind: input, shape index: {}]   ;;  %s873_s2 = inlined_call_operand.vmem [shape: f32[8,36], index: 2, kind: input, shape index: {}]   ;;  %s874_s3 = inlined_call_operand.vmem [shape: f32[2,8,256], index: 3, kind: output, shape index: {0}]   ;;  %s875_s4 = inlined_call_operand.vmem [shape: f32[2,8,1], index: 4, kind: output, shape index: {1}]   ;;  %s876_s5 = inlined_call_operand.vmem [shape: f32[2,8,1], index: 5, kind: output, shape index: {2}]  }
   0x1 LB: > { %s663_s19 = sadd.s32 4294967295, %s705_s18   ;;  %p667_p0 = scmp.ge.s32.totalorder %s705_s18, 1  ;;  %s705_s18 = sphi %s746_s18, %s16_s18  }
   0x2   : > { %p192_p1 = scmp.lt.s32.totalorder %s705_s18, 3 }
   0x4   : > { %p193_p2 = pnand %p667_p0, %p192_p1 }
   0x5   : > { %p228_p3 = scmp.lt.s32.totalorder (!%p193_p2), %s663_s19, 1  ;;  %s707_s24 = smov (!%p193_p2), 16  }
   0x6   : > { %196 = sbr.rel (%p193_p2) target bundleno = 479 (0x1df), region = 32  ;;  %s708_s25 = smov (!%p193_p2), 15  }
   0x7   : > { %s709_s26 = smov (!%p193_p2), 1   ;;  %s710_s27 = smov (!%p193_p2), 127  }
   0x8   : > { %s711_s28 = smov (!%p193_p2), 113   ;;  %s712_s29 = smov (!%p193_p2), 112  }
   0x9   : > { %s713_s30 = smov (!%p193_p2), 17   ;;  %s714_s6 = smov (!%p193_p2), 111  }
   0xb   : > { %s892_s19 = smov (!%p228_p3, %s663_s19), 1  ;;  %v247_v20 = vlaneseq  ;;  %v250_v28 = vld [vmem:[%s872_s1] sm:$0x3]  ;;  %v715_v31 = vmov 0  }
   0xc   : > { %s757_s20 = sshll.u32 %s892_s19, 3  ;;  %vm266_vm2 = vcmp.ge.s32.totalorder %v250_v28, 1  ;;  %vm322_vm6 = vcmp.le.s32.totalorder %v250_v28, 14  ;;  %s681_s11 = sshll.u32 %s892_s19, 4 }
   0xd   : > { %s232_s23 = scalar_lea.vmem %s871_s0, %s757_s20  ;;  %v765_v21 = vand.u32 127, %v247_v20  ;;  %v267_v32 = vsel %vm266_vm2, 1, %v715_v31  ;;  %v323_v39 = vsel %vm322_vm6, 1, %v715_v31  ;;  %s237_s14 = scalar_lea.vmem %s874_s3, %s681_s11 }
   0xe   : > { %v246_v0 = vld [vmem:[%s232_s23] sm:$0xff]  ;;  %v268_v34 = vperm.slane %v267_v32, 0  ;;  %v269_v35 = vperm.slane %v267_v32, 1  ;;  %v324_v42 = vperm.slane %v323_v39, 0  ;;  %v325_v43 = vperm.slane %v323_v39, 1  ;;  %s241_s17 = scalar_lea.vmem %s875_s4, %s757_s20  ;;  %s245_s22 = scalar_lea.vmem %s876_s5, %s757_s20 }
   0xf   : > { %252 = vst [vmem:[#allocation1] ss:$2 sm:$0xff] %v246_v0  ;;  %vm293_vm0 = vcmp.lt.s32.totalorder %v765_v21, 16  ;;  %vm264_vm1 = vcmp.ge.s32.totalorder %v765_v21, 16  ;;  %vm349_vm3 = vcmp.lt.s32.totalorder %v765_v21, 1  ;;  %vm380_vm7 = vcmp.lt.s32.totalorder %v765_v21, 127 }
  0x10   : > { %vm352_vm4 = vcmp.eq.s32.totalorder %v268_v34, 1  ;;  %vm353_vm5 = vcmp.eq.s32.totalorder %v269_v35, 1  ;;  %vm383_vm8 = vcmp.eq.s32.totalorder %v324_v42, 1  ;;  %vm384_vm9 = vcmp.eq.s32.totalorder %v325_v43, 1 }
  0x11   : > { %v249_v51 = vadd.s32 128, %v765_v21  ;;  %vm781_vm10 = vcmp.ne.s32.totalorder %v269_v35, 0  ;;  %vm785_vm12 = vcmp.ne.s32.totalorder %v268_v34, 0  ;;  %vm404_vm14 = vcmp.lt.s32.totalorder %v765_v21, 113 }
  0x12   : > { %v411_v56 = vsel %vm785_vm12, 1, %v715_v31  ;;  %vm797_vm2 = vcmp.ne.s32.totalorder %v325_v43, 0 }
  0x13   : > { %vm408_vm11 = vcmp.lt.s32.totalorder %v249_v51, 240  ;;  %v413_v58 = vperm.slane %v411_v56, 0  ;;  %v331_v28 = vsel %vm797_vm2, 1, %v715_v31  ;;  %v471_v51 = vld [vmem:[%s873_s2] sm:$0xff] }
  0x14   : > { %vm410_vm13 = vmand %vm408_vm11, %vm781_vm10 }
  0x15   : > { %v412_v57 = vsel %vm410_vm13, 1, %v715_v31  ;;  %vm415_vm15 = vcmp.eq.s32.totalorder %v413_v58, 1  ;;  %vm460_vm6 = vmand %vm408_vm11, %vm797_vm2  ;;  %vm482_vm2 = vcmask 293888  }
  0x16   : > { %v253_v1 = vld.sshfl [vmem:[#allocation1] sm:$0xff pattern:$0x75316420]  ;;  %v254_v2 = vld.sshfl [vmem:[#allocation1 + $0x8] sm:$0xff pattern:$0x75316420] }
  0x17   : > { %284 = vst [vmem:[#allocation1] ss:$2 sm:$0xff] %v246_v0  ;;  %v414_v59 = vperm.slane %v412_v57, 0 }
  0x1e   : > { %v285_v3 = vld.sshfl [vmem:[#allocation1] sm:$0xff pattern:$0x75316420]  ;;  %v286_v4 = vld.sshfl [vmem:[#allocation1 + $0x8] sm:$0xff pattern:$0x75316420] }
  0x1f   : > { %310 = vst [vmem:[#allocation1] ss:$2 sm:$0xff] %v246_v0  ;;  %289 = vrot.lane.b32.xlu1 %v285_v3, %s707_s24  ;;  %291 = vrot.lane.b32.xlu2 %v286_v4, %s707_s24 }
  0x26   : > { %v311_v5 = vld.sshfl [vmem:[#allocation1] sm:$0xff pattern:$0x75316420]  ;;  %v312_v6 = vld.sshfl [vmem:[#allocation1 + $0x8] sm:$0xff pattern:$0x75316420] }
  0x27   : > { %315 = vrot.lane.b32.xlu0 %v311_v5, %s708_s25  ;;  %340 = vst [vmem:[#allocation1] ss:$2 sm:$0xff] %v246_v0 }
  0x2e   : > { %v342_v7 = vld.sshfl [vmem:[#allocation1 + $0x8] sm:$0xff pattern:$0x75316420]  ;;  %v341_v8 = vld.sshfl [vmem:[#allocation1] sm:$0xff pattern:$0x75316420] }
  0x2f   : > { %347 = vrot.lane.b32.xlu0 %v342_v7, %s709_s26  ;;  %364 = vst [vmem:[#allocation1] ss:$2 sm:$0xff] %v246_v0  ;;  %345 = vrot.lane.b32.xlu2 %v341_v8, %s709_s26  ;;  %v275_v8 = vsel %vm781_vm10, 1, %v715_v31 }
  0x36   : > { %v365_v9 = vld.sshfl [vmem:[#allocation1] sm:$0xff pattern:$0x75316420]  ;;  %v366_v10 = vld.sshfl [vmem:[#allocation1 + $0x8] sm:$0xff pattern:$0x75316420] }
  0x37   : > { %371 = vst [vmem:[#allocation1] ss:$2 sm:$0xff] %v246_v0 }
  0x38   : > { %369 = vst [vmem:[#allocation2 + $0x48] sm:$0xf] %v365_v9 }
  0x39   : > { %370 = vst [vmem:[#allocation2 + $0x28] sm:$0xf] %v366_v10 }
  0x3e   : > { %v372_v11 = vld.sshfl [vmem:[#allocation1] sm:$0xff pattern:$0x75316420]  ;;  %v373_v12 = vld.sshfl [vmem:[#allocation1 + $0x8] sm:$0xff pattern:$0x75316420] }
  0x3f   : > { %395 = vst [vmem:[#allocation1] ss:$2 sm:$0xff] %v246_v0  ;;  %376 = vrot.lane.b32.xlu2 %v372_v11, %s710_s27 }
  0x46   : > { %v396_v13 = vld.sshfl [vmem:[#allocation1] sm:$0xff pattern:$0x75316420]  ;;  %v397_v14 = vld.sshfl [vmem:[#allocation1 + $0x8] sm:$0xff pattern:$0x75316420] }
  0x47   : > { %400 = vrot.lane.b32.xlu0 %v396_v13, %s711_s28  ;;  %402 = vrot.lane.b32.xlu1 %v397_v14, %s711_s28  ;;  %421 = vst [vmem:[#allocation1] ss:$2 sm:$0xff] %v246_v0 }
  0x48   : > { %378 = vrot.lane.b32.xlu2 %v373_v12, %s710_s27  ;;  %v462_v12 = vsel %vm460_vm6, 1, %v715_v31 }
  0x4e   : > { %v422_v15 = vld.sshfl [vmem:[#allocation1] sm:$0xff pattern:$0x75316420]  ;;  %v423_v16 = vld.sshfl [vmem:[#allocation1 + $0x8] sm:$0xff pattern:$0x75316420] }
  0x4f   : > { %426 = vrot.lane.b32.xlu0 %v422_v15, %s712_s29  ;;  %447 = vst [vmem:[#allocation1] ss:$2 sm:$0xff] %v246_v0 }
  0x50   : > { %257 = vrot.lane.b32.xlu2 %v253_v1, %s713_s30 }
  0x56   : > { %v448_v17 = vld.sshfl [vmem:[#allocation1] sm:$0xff pattern:$0x75316420]  ;;  %v449_v18 = vld.sshfl [vmem:[#allocation1 + $0x8] sm:$0xff pattern:$0x75316420] }
  0x57   : > { %428 = vrot.lane.b32.xlu0 %v423_v16, %s712_s29  ;;  %452 = vrot.lane.b32.xlu1 %v448_v17, %s714_s6  ;;  %v277_v17 = vperm.slane %v275_v8, 0 }
  0x5f   : > { %259 = vrot.lane.b32.xlu0 %v254_v2, %s713_s30  ;;  %454 = vrot.lane.b32.xlu1 %v449_v18, %s714_s6 }
  0x67   : > { %317 = vrot.lane.b32.xlu1 %v312_v6, %s708_s25 }
  0x79   : > { %v292_v19 = vpop.permute.xlu2 %291 }
  0x89   : > { %v346_v22 = vpop.permute.xlu2 %345 }
  0x91   : > { %v290_v23 = vpop.permute.xlu1 %289 }
  0x92   : > { %v294_v24 = vsel %vm293_vm0, %v290_v23, %v292_v19  ;;  %v295_v25 = vsel %vm293_vm0, %v292_v19, %v290_v23  ;;  %vm416_vm0 = vcmp.eq.s32.totalorder %v414_v59, 1  ;;  %v464_v19 = vperm.slane %v462_v12, 0 }
  0x93   : > { %v300_v26 = vsel %vm264_vm1, %v295_v25, 0.0  ;;  %v305_v27 = vrot.slane %v294_v24, 4 }
  0x94   : > { %v304_v29 = vrot.slane %v300_v26, 4  ;;  %vm836_vm13 = vcmp.eq.s32.totalorder %v464_v19, 1 }
  0x95   : > { %309 = vst [vmem:[#allocation2] sm:$0xf0] %v305_v27 }
  0x96   : > { %308 = vst [vmem:[#allocation2 + $0x30] sm:$0xf0] %v304_v29 }
  0x99   : > { %v774_v30 = vpop.permute.xlu0 %315  ;;  %v377_v33 = vpop.permute.xlu2 %376 }
  0xa1   : > { %v348_v36 = vpop.permute.xlu0 %347 }
  0xa2   : > { %v350_v37 = vsel %vm349_vm3, %v346_v22, %v348_v36  ;;  %v351_v38 = vsel %vm349_vm3, %v348_v36, %v346_v22  ;;  %v379_v44 = vpop.permute.xlu2 %378  ;;  %vm272_vm3 = vmand %vm264_vm1, %vm785_vm12 }
  0xa3   : > { %v354_v40 = vsel %vm352_vm4, %v351_v38, 0.0  ;;  %v355_v41 = vsel %vm353_vm5, %v350_v37, 0.0  ;;  %v381_v47 = vsel %vm380_vm7, %v377_v33, %v379_v44  ;;  %v382_v48 = vsel %vm380_vm7, %v379_v44, %v377_v33 }
  0xa4   : > { %v358_v45 = vrot.slane %v354_v40, 4  ;;  %v359_v46 = vrot.slane %v355_v41, 4  ;;  %v385_v49 = vsel %vm383_vm8, %v381_v47, 0.0  ;;  %v386_v50 = vsel %vm384_vm9, %v382_v48, 0.0 }
  0xa5   : > { %v389_v52 = vrot.slane %v385_v49, 4  ;;  %v390_v53 = vrot.slane %v386_v50, 4  ;;  %vm805_vm4 = vcmp.ne.s32.totalorder %v324_v42, 0  ;;  %vm430_vm5 = vcmp.lt.s32.totalorder %v765_v21, 112 }
  0xa6   : > { %362 = vst [vmem:[#allocation2 + $0x18] sm:$0xf0] %v358_v45  ;;  %v274_v7 = vsel %vm272_vm3, 1, %v715_v31  ;;  %v461_v9 = vsel %vm805_vm4, 1, %v715_v31  ;;  %vm328_vm7 = vmand %vm264_vm1, %vm805_vm4  ;;  %vm261_vm8 = vcmp.lt.s32.totalorder %v765_v21, 17  ;;  %vm456_vm9 = vcmp.lt.s32.totalorder %v765_v21, 111 }
  0xa7   : > { %363 = vst [vmem:[#allocation2 + $0x10] sm:$0xf0] %v359_v46  ;;  %v276_v16 = vperm.slane %v274_v7, 0  ;;  %v463_v18 = vperm.slane %v461_v9, 0  ;;  %v330_v27 = vsel %vm328_vm7, 1, %v715_v31  ;;  %v333_v40 = vperm.slane %v331_v28, 0 }
  0xa8   : > { %393 = vst [vmem:[#allocation2 + $0x48] sm:$0xf0] %v389_v52  ;;  %v332_v39 = vperm.slane %v330_v27, 0  ;;  %vm319_vm1 = vcmp.lt.s32.totalorder %v765_v21, 15  ;;  %vm538_vm3 = vcmask 7168  }
  0xa9   : > { %394 = vst [vmem:[#allocation2 + $0x28] sm:$0xf0] %v390_v53  ;;  %vm278_vm10 = vcmp.eq.s32.totalorder %v276_v16, 1  ;;  %vm832_vm12 = vcmp.eq.s32.totalorder %v463_v18, 1 }
  0xaa   : > { %v258_v20 = vpop.permute.xlu2 %257 }
  0xaf   : > { %v476_v21 = vld [vmem:[#allocation2 + $0x48] sm:$0xff] }
  0xb0   : > { %v477_v49 = vld [vmem:[#allocation2 + $0x28] sm:$0xff] }
  0xb9   : > { %v401_v60 = vpop.permute.xlu0 %400  ;;  %v403_v61 = vpop.permute.xlu1 %402 }
  0xba   : > { %v405_v62 = vsel %vm404_vm14, %v401_v60, %v403_v61  ;;  %v406_v63 = vsel %vm404_vm14, %v403_v61, %v401_v60  ;;  %vm334_vm14 = vcmp.eq.s32.totalorder %v332_v39, 1 }
  0xbb   : > { %v417_v0 = vsel %vm415_vm15, %v405_v62, 0.0  ;;  %v418_v1 = vsel %vm416_vm0, %v406_v63, 0.0  ;;  %vm335_vm15 = vcmp.eq.s32.totalorder %v333_v40, 1  ;;  %vm486_vm0 = vcmask 1043456  }
  0xbc   : > { %419 = vst [vmem:[#allocation2 + $0x8] sm:$0xf] %v417_v0 }
  0xbd   : > { %420 = vst [vmem:[#allocation2 + $0x20] sm:$0xf] %v418_v1 }
  0xc1   : > { %v427_v2 = vpop.permute.xlu0 %426 }
  0xc9   : > { %v429_v5 = vpop.permute.xlu0 %428  ;;  %v453_v6 = vpop.permute.xlu1 %452 }
  0xca   : > { %v431_v10 = vsel %vm430_vm5, %v427_v2, %v429_v5  ;;  %v432_v11 = vsel %vm430_vm5, %v429_v5, %v427_v2 }
  0xcb   : > { %v438_v13 = vsel %vm408_vm11, %v432_v11, 0.0  ;;  %v441_v14 = vrot.slane %v431_v10, 4  ;;  %vm828_vm11 = vcmp.eq.s32.totalorder %v277_v17, 1 }
  0xcc   : > { %v442_v15 = vrot.slane %v438_v13, 4 }
  0xcd   : > { %445 = vst [vmem:[#allocation2 + $0x8] sm:$0xf0] %v441_v14 }
  0xce   : > { %446 = vst [vmem:[#allocation2 + $0x20] sm:$0xf0] %v442_v15 }
  0xd1   : > { %v260_v24 = vpop.permute.xlu0 %259  ;;  %v455_v26 = vpop.permute.xlu1 %454 }
  0xd2   : > { %v262_v29 = vsel %vm261_vm8, %v258_v20, %v260_v24  ;;  %v263_v32 = vsel %vm261_vm8, %v260_v24, %v258_v20  ;;  %v457_v33 = vsel %vm456_vm9, %v453_v6, %v455_v26  ;;  %v458_v34 = vsel %vm456_vm9, %v455_v26, %v453_v6 }
  0xd3   : > { %v280_v35 = vsel %vm278_vm10, %v263_v32, 0.0  ;;  %v281_v36 = vsel %vm828_vm11, %v262_v29, 0.0  ;;  %v467_v37 = vsel %vm832_vm12, %v457_v33, 0.0  ;;  %v468_v38 = vsel %vm836_vm13, %v458_v34, 0.0 }
  0xd4   : > { %282 = vst [vmem:[#allocation2 + $0x30] sm:$0xf] %v280_v35  ;;  %v478_v47 = vld [vmem:[#allocation2 + $0x8] sm:$0xff] }
  0xd5   : > { %283 = vst [vmem:[#allocation2] sm:$0xf] %v281_v36  ;;  %v479_v48 = vld [vmem:[#allocation2 + $0x20] sm:$0xff] }
  0xd6   : > { %469 = vst [vmem:[#allocation2 + $0x40] sm:$0xf] %v467_v37 }
  0xd7   : > { %470 = vst [vmem:[#allocation2 + $0x38] sm:$0xf] %v468_v38 }
  0xd9   : > { %v318_v31 = vpop.permute.xlu1 %317 }
  0xda   : > { %v320_v41 = vsel %vm319_vm1, %v774_v30, %v318_v31  ;;  %v321_v42 = vsel %vm319_vm1, %v318_v31, %v774_v30 }
  0xdb   : > { %v336_v43 = vsel %vm334_vm14, %v321_v42, 0.0  ;;  %v337_v44 = vsel %vm335_vm15, %v320_v41, 0.0  ;;  %v472_v52 = vld [vmem:[#allocation2 + $0x30] sm:$0xff] }
  0xdc   : > { %338 = vst [vmem:[#allocation2 + $0x18] sm:$0xf] %v336_v43  ;;  %v473_v53 = vld [vmem:[#allocation2] sm:$0xff] }
  0xdd   : > { %339 = vst [vmem:[#allocation2 + $0x10] sm:$0xf] %v337_v44  ;;  %v480_v45 = vld [vmem:[#allocation2 + $0x40] sm:$0xf] }
  0xde   : > { %674 = vmatpush.msk.msra.mxu0 %vm486_vm0, %v480_v45  ;;  %v481_v46 = vld [vmem:[#allocation2 + $0x38] sm:$0xf] }
  0xdf   : > { %676 = vmatpush.msk.msra.mxu1 %vm486_vm0, %v481_v46 }
  0xe0   : > { %505 = vmatpush.msra.mxu0 %v478_v47 }
  0xe1   : > { %525 = vmatpush.msra.mxu1 %v479_v48 }
  0xe2   : > { %506 = vmatpush.msra.mxu0 %v476_v21 }
  0xe3   : > { %526 = vmatpush.msra.mxu1 %v477_v49  ;;  %v474_v50 = vld [vmem:[#allocation2 + $0x18] sm:$0xff] }
  0xe4   : > { %507 = vmatpush.msra.mxu0 %v474_v50  ;;  %v475_v30 = vld [vmem:[#allocation2 + $0x10] sm:$0xff] }
  0xe5   : > { %527 = vmatpush.msra.mxu1 %v475_v30 }
  0xe6   : > { %508 = vmatpush.msra.mxu0 %v472_v52 }
  0xe7   : > { %528 = vmatpush.msra.mxu1 %v473_v53  ;;  %675 = vmatmul.msk.f32.vlgmr.msra.gmra.mxu0 %vm482_vm2, %v471_v51 }
  0xe8   : > { %677 = vmatmul.msk.f32.vlgmr.msra.gmra.mxu1 %vm482_vm2, %v471_v51 }
 0x164   : > { %v510_v54 = vpop.f32.mrf.mxu0 }
 0x165   : > { %533 = vst [vmem:[%s237_s14] sm:$0xff] %v510_v54  ;;  %v540_v55 = vmul.f32 %v510_v54, %v510_v54  ;;  %v530_v56 = vpop.f32.mrf.mxu1 }
 0x166   : > { %534 = vst [vmem:[%s237_s14 + $0x8] sm:$0xff] %v530_v56  ;;  %v541_v57 = vmul.f32 %v530_v56, %v530_v56  ;;  %v535_v58 = vadd.f32 %v530_v56, %v510_v54 }
 0x168   : > { %536 = vadd.xlane.f32.xlu1 %v535_v58  ;;  %v542_v59 = vadd.f32 %v541_v57, %v540_v55 }
 0x16a   : > { %543 = vadd.xlane.f32.xlu2 %v542_v59 }
 0x1db   : > { %v537_v60 = vpop.xlane.xlu1 %536 }
 0x1dc   : > { %539 = vst.msk [vmem:[%s241_s17] sm:$0xff] %vm538_vm3, %v537_v60 }
 0x1dd   : > { %v544_v61 = vpop.xlane.xlu2 %543 }
 0x1de   : > { %545 = vst.msk [vmem:[%s245_s22] sm:$0xff] %vm538_vm3, %v544_v61 }
 0x1df PF: > { %s16_s18 = sadd.s32 1, %s705_s18  }
 0x1e0   : > { %p13_p4 = scmp.ge.s32.totalorder %s16_s18, 4  }
 0x1e2   :  { %15 = sbr.rel (!%p13_p4) target bundleno = 1 (0x1), region = 86 }

</bundles_post_ra>
